<compile_context>
chip_gen: v6e
topology: v6e:2x2x1
jax: 0.10.0
libtpu: 0.0.40
codegen_flags: <defaults>
</compile_context>

<pallas_src>
import functools

import jax
import jax.numpy as jnp
from jax import lax
from jax.experimental import pallas as pl
from jax.experimental.pallas import tpu as pltpu


LN_EPS = 1e-5

# 2-D dot_general dimension numbers: A @ B^T (contract last dims), no batch dims.
_NT_DIMS = (((1,), (1,)), ((), ()))


def _bca_kernel(x_ref, c_ref, wx_ref, wc_ref, wout_ref, bout_ref, lnw_ref, lnb_ref,
                o_ref, *, heads, dim_head):
    inner = heads * dim_head
    x = x_ref[0]      # (N, D) f32 — kept f32 so the residual is exact
    ctx = c_ref[0]    # (N, D) f32

    x_bf = x.astype(jnp.bfloat16)
    c_bf = ctx.astype(jnp.bfloat16)

    # Fused projections: [qk*scale | v] = x @ [Wqk^T*scale | Wv^T], [cqk | cv] = ctx @ [...].
    xw = jnp.dot(x_bf, wx_ref[...], preferred_element_type=jnp.float32).astype(jnp.bfloat16)
    cw = jnp.dot(c_bf, wc_ref[...], preferred_element_type=jnp.float32).astype(jnp.bfloat16)
    qk, v = xw[:, :inner], xw[:, inner:]
    cqk, cv = cw[:, :inner], cw[:, inner:]

    outs = []    # per-head   attn   @ cv  -> columns of the merged "out"
    couts = []   # per-head  cattn^T @ v   -> columns of the merged "context_out"
    # Static unroll over heads (H is tiny here).
    # TODO(synk): for large head counts switch to lax.fori_loop writing into a VMEM scratch
    #             (bounds live ranges) and process heads in >=128-lane groups.
    for h in range(heads):
        lo = h * dim_head
        hi = lo + dim_head
        qk_h, v_h = qk[:, lo:hi], v[:, lo:hi]
        cqk_h, cv_h = cqk[:, lo:hi], cv[:, lo:hi]

        # sim[i, j] = <qk_i, cqk_j>  (scale already folded into the weight).
        sim = lax.dot_general(qk_h, cqk_h, _NT_DIMS,
                              preferred_element_type=jnp.float32)          # (Ni, Nj) f32

        # One exp shared by both softmaxes: subtract the per-head global max, normalize by row
        # sums (softmax over j) and, after transposing e, by row sums again (softmax over i).
        # Exact up to underflow.
        # TODO(synk): if a whole row/column of sim can sit ~88+ nats below the global max,
        #             fall back to per-axis maxes (two exps).
        m = jnp.max(jnp.max(sim, axis=-1, keepdims=True), axis=0, keepdims=True)  # (1, 1)
        e = jnp.exp(sim - m)                                                       # (Ni, Nj) f32

        attn = (e * pl.reciprocal(jnp.sum(e, axis=-1, keepdims=True),
                                  approx=True)).astype(jnp.bfloat16)               # (Ni, Nj)
        e_t = e.T                                                                  # (Nj, Ni) f32
        cattn_t = (e_t * pl.reciprocal(jnp.sum(e_t, axis=-1, keepdims=True),
                                       approx=True)).astype(jnp.bfloat16)          # (Nj, Ni)

        # out_h[i, d]  = sum_j attn[i, j]  * cv[j, d]
        outs.append(jnp.dot(attn, cv_h, preferred_element_type=jnp.float32))
        # cout_h[j, d] = sum_i cattn[i, j] * v[i, d]
        couts.append(jnp.dot(cattn_t, v_h, preferred_element_type=jnp.float32))

    # Head-merge + both output projections + (out + context_out) + both biases in ONE
    # lane-dense full-K matmul: [out_heads | cout_heads] (N, 2*inner) @ [[Wo^T], [Wco^T]].
    merged = jnp.concatenate(outs + couts, axis=-1).astype(jnp.bfloat16)   # (N, 2*inner)
    s = jnp.dot(merged, wout_ref[...], preferred_element_type=jnp.float32) + bout_ref[...]

    # LayerNorm (f32) + fused residual (x + context).
    mean = jnp.mean(s, axis=-1, keepdims=True)
    cent = s - mean
    var = jnp.mean(cent * cent, axis=-1, keepdims=True)
    normed = cent * lax.rsqrt(var + LN_EPS)
    normed = normed * lnw_ref[...] + lnb_ref[...]

    o_ref[0] = (normed + x + ctx).astype(o_ref.dtype)


def bidirectional_cross_attention(x, context, params, *, heads, dim_head):
    b, n, dim = x.shape
    inner = heads * dim_head
    assert context.shape == (b, n, dim)

    scale = dim_head ** -0.5
    f32, bf16 = jnp.float32, jnp.bfloat16

    # Pre-transpose / pre-fuse / pre-cast weights in the wrapper so the kernel only does
    # row-major bf16 matmuls and the DMA moves bf16.
    w_x = jnp.concatenate([params["to_qk"].T * scale, params["to_v"].T],
                          axis=1).astype(bf16)                                # (D, 2*inner)
    w_c = jnp.concatenate([params["context_to_qk"].T, params["context_to_v"].T],
                          axis=1).astype(bf16)                                # (D, 2*inner)
    w_out = jnp.concatenate([params["to_out_w"].T, params["context_to_out_w"].T],
                            axis=0).astype(bf16)                              # (2*inner, D)
    b_out = (params["to_out_b"] + params["context_to_out_b"]).reshape(1, dim).astype(f32)
    lnw = params["norm_out_w"].reshape(1, dim).astype(f32)
    lnb = params["norm_out_b"].reshape(1, dim).astype(f32)

    def const_spec(shape):
        # Constant index_map: Pallas fetches these once and does not re-DMA across grid steps.
        # (pipeline_mode=pl.Buffered(1) could additionally reclaim the duplicate weight buffer
        #  on VMEM-tight parts such as v7x.)
        return pl.BlockSpec(shape, lambda i: (0,) * len(shape))

    kernel = functools.partial(_bca_kernel, heads=heads, dim_head=dim_head)

    return pl.pallas_call(
        kernel,
        out_shape=jax.ShapeDtypeStruct((b, n, dim), f32),
        grid_spec=pltpu.PrefetchScalarGridSpec(
            num_scalar_prefetch=0,
            grid=(b,),
            in_specs=[
                pl.BlockSpec((1, n, dim), lambda i: (i, 0, 0)),   # x
                pl.BlockSpec((1, n, dim), lambda i: (i, 0, 0)),   # context
                const_spec(w_x.shape),
                const_spec(w_c.shape),
                const_spec(w_out.shape),
                const_spec(b_out.shape),
                const_spec(lnw.shape),
                const_spec(lnb.shape),
            ],
            out_specs=pl.BlockSpec((1, n, dim), lambda i: (i, 0, 0)),
        ),
        compiler_params=pltpu.CompilerParams(
            dimension_semantics=("parallel",),          # batch shards across TCs (v7x megacore)
            vmem_limit_bytes=64 * 1024 * 1024,
        ),
    )(x, context, w_x, w_c, w_out, b_out, lnw, lnb)


def reference_forward(x, context, params, *, heads, dim_head):
    """Pure-JAX f32 reference mirroring the PyTorch forward (prenorm/dropout/talking_heads off)."""
    b, n, dim = x.shape
    scale = dim_head ** -0.5
    res = x + context

    def split_heads(t):
        return t.reshape(b, n, heads, dim_head).transpose(0, 2, 1, 3)  # (b,h,n,d)

    qk = split_heads(x @ params["to_qk"].T)
    v = split_heads(x @ params["to_v"].T)
    cqk = split_heads(context @ params["context_to_qk"].T)
    cv = split_heads(context @ params["context_to_v"].T)

    sim = jnp.einsum("bhid,bhjd->bhij", qk, cqk) * scale
    attn = jax.nn.softmax(sim, axis=-1)
    cattn = jax.nn.softmax(sim, axis=-2)

    out = jnp.einsum("bhij,bhjd->bhid", attn, cv)
    cout = jnp.einsum("bhji,bhjd->bhid", cattn, v)

    def merge_heads(t):
        return t.transpose(0, 2, 1, 3).reshape(b, n, heads * dim_head)

    out = merge_heads(out) @ params["to_out_w"].T + params["to_out_b"]
    cout = merge_heads(cout) @ params["context_to_out_w"].T + params["context_to_out_b"]

    s = out + cout
    mean = jnp.mean(s, axis=-1, keepdims=True)
    var = jnp.mean((s - mean) ** 2, axis=-1, keepdims=True)
    normed = (s - mean) / jnp.sqrt(var + LN_EPS)
    normed = normed * params["norm_out_w"] + params["norm_out_b"]
    return normed + res


def init_params(key, dim, heads, dim_head):
    inner = heads * dim_head
    ks = jax.random.split(key, 10)
    scale = 0.05
    return {
        "to_qk": scale * jax.random.normal(ks[0], (inner, dim), jnp.float32),
        "context_to_qk": scale * jax.random.normal(ks[1], (inner, dim), jnp.float32),
        "to_v": scale * jax.random.normal(ks[2], (inner, dim), jnp.float32),
        "context_to_v": scale * jax.random.normal(ks[3], (inner, dim), jnp.float32),
        "to_out_w": scale * jax.random.normal(ks[4], (dim, inner), jnp.float32),
        "to_out_b": 0.1 * jax.random.normal(ks[5], (dim,), jnp.float32),
        "context_to_out_w": scale * jax.random.normal(ks[6], (dim, inner), jnp.float32),
        "context_to_out_b": 0.1 * jax.random.normal(ks[7], (dim,), jnp.float32),
        "norm_out_w": 1.0 + 0.1 * jax.random.normal(ks[8], (dim,), jnp.float32),
        "norm_out_b": 0.1 * jax.random.normal(ks[9], (dim,), jnp.float32),
    }


if __name__ == "__main__":
    # Small but lane-friendly: dim=128 keeps the output/store path lane-dense.
    B, N, DIM = 2, 16, 128
    HEADS, DIM_HEAD = 4, 32

    key = jax.random.PRNGKey(0)
    kx, kc, kp = jax.random.split(key, 3)
    x = jax.random.normal(kx, (B, N, DIM), jnp.float32)
    context = jax.random.normal(kc, (B, N, DIM), jnp.float32)
    params = init_params(kp, DIM, HEADS, DIM_HEAD)

    out = bidirectional_cross_attention(x, context, params, heads=HEADS, dim_head=DIM_HEAD)
    out = jax.block_until_ready(out)

    ref = reference_forward(x, context, params, heads=HEADS, dim_head=DIM_HEAD)
    assert out.shape == (B, N, DIM)
    # bf16 MXU operands + approx-reciprocal softmax denominators loosen tolerance vs the f32 ref.
    assert jnp.allclose(out, ref, atol=5e-2, rtol=5e-2), (
        f"mismatch vs reference, max abs err = {jnp.max(jnp.abs(out - ref))}")
    print("KERNEL_OK")
</pallas_src>

<mosaic_0001>
module attributes {stable_mosaic.version = 11 : i64} {
  func.func @_bca_kernel(%arg0: i32, %arg1: memref<1x16x128xf32, #tpu.memory_space<vmem>>, %arg2: memref<1x16x128xf32, #tpu.memory_space<vmem>>, %arg3: memref<128x256xbf16, #tpu.memory_space<vmem>>, %arg4: memref<128x256xbf16, #tpu.memory_space<vmem>>, %arg5: memref<256x128xbf16, #tpu.memory_space<vmem>>, %arg6: memref<1x128xf32, #tpu.memory_space<vmem>>, %arg7: memref<1x128xf32, #tpu.memory_space<vmem>>, %arg8: memref<1x128xf32, #tpu.memory_space<vmem>>, %arg9: memref<1x16x128xf32, #tpu.memory_space<vmem>>) attributes {dimension_semantics = [#tpu.dimension_semantics<parallel>], iteration_bounds = array<i64: 2>, scalar_prefetch = 0 : i64, scratch_operands = 0 : i64, tpu.core_type = #tpu.core_type<tc>, window_params = [{transform_indices = @transform_0, window_bounds = array<i64: 1, 16, 128>}, {transform_indices = @transform_1, window_bounds = array<i64: 1, 16, 128>}, {pipeline_mode = #tpu.pipeline_mode<synchronous>, transform_indices = @transform_2, window_bounds = array<i64: 128, 256>}, {pipeline_mode = #tpu.pipeline_mode<synchronous>, transform_indices = @transform_3, window_bounds = array<i64: 128, 256>}, {pipeline_mode = #tpu.pipeline_mode<synchronous>, transform_indices = @transform_4, window_bounds = array<i64: 256, 128>}, {pipeline_mode = #tpu.pipeline_mode<synchronous>, transform_indices = @transform_5, window_bounds = array<i64: 1, 128>}, {pipeline_mode = #tpu.pipeline_mode<synchronous>, transform_indices = @transform_6, window_bounds = array<i64: 1, 128>}, {pipeline_mode = #tpu.pipeline_mode<synchronous>, transform_indices = @transform_7, window_bounds = array<i64: 1, 128>}, {transform_indices = @transform_8, window_bounds = array<i64: 1, 16, 128>}]} {
    %c0 = arith.constant 0 : index
    %c0_0 = arith.constant 0 : index
    %c0_1 = arith.constant 0 : index
    %0 = vector.load %arg1[%c0, %c0_0, %c0_1] : memref<1x16x128xf32, #tpu.memory_space<vmem>>, vector<1x16x128xf32>
    %1 = vector.shape_cast %0 : vector<1x16x128xf32> to vector<16x128xf32>
    %c0_2 = arith.constant 0 : index
    %c0_3 = arith.constant 0 : index
    %c0_4 = arith.constant 0 : index
    %2 = vector.load %arg2[%c0_2, %c0_3, %c0_4] : memref<1x16x128xf32, #tpu.memory_space<vmem>>, vector<1x16x128xf32>
    %3 = vector.shape_cast %2 : vector<1x16x128xf32> to vector<16x128xf32>
    %4 = arith.truncf %1 : vector<16x128xf32> to vector<16x128xbf16>
    %5 = arith.truncf %3 : vector<16x128xf32> to vector<16x128xbf16>
    %c0_5 = arith.constant 0 : index
    %c0_6 = arith.constant 0 : index
    %6 = vector.load %arg3[%c0_5, %c0_6] : memref<128x256xbf16, #tpu.memory_space<vmem>>, vector<128x256xbf16>
    %cst = arith.constant dense<0.000000e+00> : vector<16x256xf32>
    %7 = tpu.matmul %4, %6, %cst {dimension_numbers = #tpu.dot_dimension_numbers<[1], [0], [0], [1], [0, 0, 1, 1], [], []>} : vector<16x128xbf16>, vector<128x256xbf16>, vector<16x256xf32> -> vector<16x256xf32>
    %8 = arith.truncf %7 : vector<16x256xf32> to vector<16x256xbf16>
    %c0_7 = arith.constant 0 : index
    %c0_8 = arith.constant 0 : index
    %9 = vector.load %arg4[%c0_7, %c0_8] : memref<128x256xbf16, #tpu.memory_space<vmem>>, vector<128x256xbf16>
    %cst_9 = arith.constant dense<0.000000e+00> : vector<16x256xf32>
    %10 = tpu.matmul %5, %9, %cst_9 {dimension_numbers = #tpu.dot_dimension_numbers<[1], [0], [0], [1], [0, 0, 1, 1], [], []>} : vector<16x128xbf16>, vector<128x256xbf16>, vector<16x256xf32> -> vector<16x256xf32>
    %11 = arith.truncf %10 : vector<16x256xf32> to vector<16x256xbf16>
    %12 = vector.extract_strided_slice %8 {offsets = [0, 0], sizes = [16, 128], strides = [1, 1]} : vector<16x256xbf16> to vector<16x128xbf16>
    %13 = vector.extract_strided_slice %8 {offsets = [0, 128], sizes = [16, 128], strides = [1, 1]} : vector<16x256xbf16> to vector<16x128xbf16>
    %14 = vector.extract_strided_slice %11 {offsets = [0, 0], sizes = [16, 128], strides = [1, 1]} : vector<16x256xbf16> to vector<16x128xbf16>
    %15 = vector.extract_strided_slice %11 {offsets = [0, 128], sizes = [16, 128], strides = [1, 1]} : vector<16x256xbf16> to vector<16x128xbf16>
    %16 = vector.extract_strided_slice %12 {offsets = [0, 0], sizes = [16, 32], strides = [1, 1]} : vector<16x128xbf16> to vector<16x32xbf16>
    %17 = vector.extract_strided_slice %13 {offsets = [0, 0], sizes = [16, 32], strides = [1, 1]} : vector<16x128xbf16> to vector<16x32xbf16>
    %18 = vector.extract_strided_slice %14 {offsets = [0, 0], sizes = [16, 32], strides = [1, 1]} : vector<16x128xbf16> to vector<16x32xbf16>
    %19 = vector.extract_strided_slice %15 {offsets = [0, 0], sizes = [16, 32], strides = [1, 1]} : vector<16x128xbf16> to vector<16x32xbf16>
    %cst_10 = arith.constant dense<0.000000e+00> : vector<16x16xf32>
    %20 = tpu.matmul %16, %18, %cst_10 {dimension_numbers = #tpu.dot_dimension_numbers<[1], [1], [0], [0], [0, 0, 1, 0], [], []>} : vector<16x32xbf16>, vector<16x32xbf16>, vector<16x16xf32> -> vector<16x16xf32>
    %cst_11 = arith.constant dense<0xFF800000> : vector<16xf32>
    %21 = vector.multi_reduction <maximumf>, %20, %cst_11 [1] : vector<16x16xf32> to vector<16xf32>
    %22 = vector.shape_cast %21 : vector<16xf32> to vector<16x1xf32>
    %cst_12 = arith.constant dense<0xFF800000> : vector<1xf32>
    %23 = vector.multi_reduction <maximumf>, %22, %cst_12 [0] : vector<16x1xf32> to vector<1xf32>
    %24 = vector.shape_cast %23 : vector<1xf32> to vector<1x1xf32>
    %25 = vector.broadcast %24 : vector<1x1xf32> to vector<16x16xf32>
    %26 = arith.subf %20, %25 : vector<16x16xf32>
    %27 = math.exp %26 : vector<16x16xf32>
    %cst_13 = arith.constant dense<0.000000e+00> : vector<16xf32>
    %28 = vector.multi_reduction <add>, %27, %cst_13 [1] : vector<16x16xf32> to vector<16xf32>
    %29 = vector.shape_cast %28 : vector<16xf32> to vector<16x1xf32>
    %30 = tpu.reciprocal %29 {approx = true} : vector<16x1xf32> -> vector<16x1xf32>
    %31 = vector.broadcast %30 : vector<16x1xf32> to vector<16x16xf32>
    %32 = arith.mulf %27, %31 : vector<16x16xf32>
    %33 = arith.truncf %32 : vector<16x16xf32> to vector<16x16xbf16>
    %34 = tpu.transpose %27, [1, 0] : vector<16x16xf32> -> vector<16x16xf32>
    %cst_14 = arith.constant dense<0.000000e+00> : vector<16xf32>
    %35 = vector.multi_reduction <add>, %34, %cst_14 [1] : vector<16x16xf32> to vector<16xf32>
    %36 = vector.shape_cast %35 : vector<16xf32> to vector<16x1xf32>
    %37 = tpu.reciprocal %36 {approx = true} : vector<16x1xf32> -> vector<16x1xf32>
    %38 = vector.broadcast %37 : vector<16x1xf32> to vector<16x16xf32>
    %39 = arith.mulf %34, %38 : vector<16x16xf32>
    %40 = arith.truncf %39 : vector<16x16xf32> to vector<16x16xbf16>
    %cst_15 = arith.constant dense<0.000000e+00> : vector<16x32xf32>
    %41 = tpu.matmul %33, %19, %cst_15 {dimension_numbers = #tpu.dot_dimension_numbers<[1], [0], [0], [1], [0, 0, 1, 1], [], []>} : vector<16x16xbf16>, vector<16x32xbf16>, vector<16x32xf32> -> vector<16x32xf32>
    %cst_16 = arith.constant dense<0.000000e+00> : vector<16x32xf32>
    %42 = tpu.matmul %40, %17, %cst_16 {dimension_numbers = #tpu.dot_dimension_numbers<[1], [0], [0], [1], [0, 0, 1, 1], [], []>} : vector<16x16xbf16>, vector<16x32xbf16>, vector<16x32xf32> -> vector<16x32xf32>
    %43 = vector.extract_strided_slice %12 {offsets = [0, 32], sizes = [16, 32], strides = [1, 1]} : vector<16x128xbf16> to vector<16x32xbf16>
    %44 = vector.extract_strided_slice %13 {offsets = [0, 32], sizes = [16, 32], strides = [1, 1]} : vector<16x128xbf16> to vector<16x32xbf16>
    %45 = vector.extract_strided_slice %14 {offsets = [0, 32], sizes = [16, 32], strides = [1, 1]} : vector<16x128xbf16> to vector<16x32xbf16>
    %46 = vector.extract_strided_slice %15 {offsets = [0, 32], sizes = [16, 32], strides = [1, 1]} : vector<16x128xbf16> to vector<16x32xbf16>
    %cst_17 = arith.constant dense<0.000000e+00> : vector<16x16xf32>
    %47 = tpu.matmul %43, %45, %cst_17 {dimension_numbers = #tpu.dot_dimension_numbers<[1], [1], [0], [0], [0, 0, 1, 0], [], []>} : vector<16x32xbf16>, vector<16x32xbf16>, vector<16x16xf32> -> vector<16x16xf32>
    %cst_18 = arith.constant dense<0xFF800000> : vector<16xf32>
    %48 = vector.multi_reduction <maximumf>, %47, %cst_18 [1] : vector<16x16xf32> to vector<16xf32>
    %49 = vector.shape_cast %48 : vector<16xf32> to vector<16x1xf32>
    %cst_19 = arith.constant dense<0xFF800000> : vector<1xf32>
    %50 = vector.multi_reduction <maximumf>, %49, %cst_19 [0] : vector<16x1xf32> to vector<1xf32>
    %51 = vector.shape_cast %50 : vector<1xf32> to vector<1x1xf32>
    %52 = vector.broadcast %51 : vector<1x1xf32> to vector<16x16xf32>
    %53 = arith.subf %47, %52 : vector<16x16xf32>
    %54 = math.exp %53 : vector<16x16xf32>
    %cst_20 = arith.constant dense<0.000000e+00> : vector<16xf32>
    %55 = vector.multi_reduction <add>, %54, %cst_20 [1] : vector<16x16xf32> to vector<16xf32>
    %56 = vector.shape_cast %55 : vector<16xf32> to vector<16x1xf32>
    %57 = tpu.reciprocal %56 {approx = true} : vector<16x1xf32> -> vector<16x1xf32>
    %58 = vector.broadcast %57 : vector<16x1xf32> to vector<16x16xf32>
    %59 = arith.mulf %54, %58 : vector<16x16xf32>
    %60 = arith.truncf %59 : vector<16x16xf32> to vector<16x16xbf16>
    %61 = tpu.transpose %54, [1, 0] : vector<16x16xf32> -> vector<16x16xf32>
    %cst_21 = arith.constant dense<0.000000e+00> : vector<16xf32>
    %62 = vector.multi_reduction <add>, %61, %cst_21 [1] : vector<16x16xf32> to vector<16xf32>
    %63 = vector.shape_cast %62 : vector<16xf32> to vector<16x1xf32>
    %64 = tpu.reciprocal %63 {approx = true} : vector<16x1xf32> -> vector<16x1xf32>
    %65 = vector.broadcast %64 : vector<16x1xf32> to vector<16x16xf32>
    %66 = arith.mulf %61, %65 : vector<16x16xf32>
    %67 = arith.truncf %66 : vector<16x16xf32> to vector<16x16xbf16>
    %cst_22 = arith.constant dense<0.000000e+00> : vector<16x32xf32>
    %68 = tpu.matmul %60, %46, %cst_22 {dimension_numbers = #tpu.dot_dimension_numbers<[1], [0], [0], [1], [0, 0, 1, 1], [], []>} : vector<16x16xbf16>, vector<16x32xbf16>, vector<16x32xf32> -> vector<16x32xf32>
    %cst_23 = arith.constant dense<0.000000e+00> : vector<16x32xf32>
    %69 = tpu.matmul %67, %44, %cst_23 {dimension_numbers = #tpu.dot_dimension_numbers<[1], [0], [0], [1], [0, 0, 1, 1], [], []>} : vector<16x16xbf16>, vector<16x32xbf16>, vector<16x32xf32> -> vector<16x32xf32>
    %70 = vector.extract_strided_slice %12 {offsets = [0, 64], sizes = [16, 32], strides = [1, 1]} : vector<16x128xbf16> to vector<16x32xbf16>
    %71 = vector.extract_strided_slice %13 {offsets = [0, 64], sizes = [16, 32], strides = [1, 1]} : vector<16x128xbf16> to vector<16x32xbf16>
    %72 = vector.extract_strided_slice %14 {offsets = [0, 64], sizes = [16, 32], strides = [1, 1]} : vector<16x128xbf16> to vector<16x32xbf16>
    %73 = vector.extract_strided_slice %15 {offsets = [0, 64], sizes = [16, 32], strides = [1, 1]} : vector<16x128xbf16> to vector<16x32xbf16>
    %cst_24 = arith.constant dense<0.000000e+00> : vector<16x16xf32>
    %74 = tpu.matmul %70, %72, %cst_24 {dimension_numbers = #tpu.dot_dimension_numbers<[1], [1], [0], [0], [0, 0, 1, 0], [], []>} : vector<16x32xbf16>, vector<16x32xbf16>, vector<16x16xf32> -> vector<16x16xf32>
    %cst_25 = arith.constant dense<0xFF800000> : vector<16xf32>
    %75 = vector.multi_reduction <maximumf>, %74, %cst_25 [1] : vector<16x16xf32> to vector<16xf32>
    %76 = vector.shape_cast %75 : vector<16xf32> to vector<16x1xf32>
    %cst_26 = arith.constant dense<0xFF800000> : vector<1xf32>
    %77 = vector.multi_reduction <maximumf>, %76, %cst_26 [0] : vector<16x1xf32> to vector<1xf32>
    %78 = vector.shape_cast %77 : vector<1xf32> to vector<1x1xf32>
    %79 = vector.broadcast %78 : vector<1x1xf32> to vector<16x16xf32>
    %80 = arith.subf %74, %79 : vector<16x16xf32>
    %81 = math.exp %80 : vector<16x16xf32>
    %cst_27 = arith.constant dense<0.000000e+00> : vector<16xf32>
    %82 = vector.multi_reduction <add>, %81, %cst_27 [1] : vector<16x16xf32> to vector<16xf32>
    %83 = vector.shape_cast %82 : vector<16xf32> to vector<16x1xf32>
    %84 = tpu.reciprocal %83 {approx = true} : vector<16x1xf32> -> vector<16x1xf32>
    %85 = vector.broadcast %84 : vector<16x1xf32> to vector<16x16xf32>
    %86 = arith.mulf %81, %85 : vector<16x16xf32>
    %87 = arith.truncf %86 : vector<16x16xf32> to vector<16x16xbf16>
    %88 = tpu.transpose %81, [1, 0] : vector<16x16xf32> -> vector<16x16xf32>
    %cst_28 = arith.constant dense<0.000000e+00> : vector<16xf32>
    %89 = vector.multi_reduction <add>, %88, %cst_28 [1] : vector<16x16xf32> to vector<16xf32>
    %90 = vector.shape_cast %89 : vector<16xf32> to vector<16x1xf32>
    %91 = tpu.reciprocal %90 {approx = true} : vector<16x1xf32> -> vector<16x1xf32>
    %92 = vector.broadcast %91 : vector<16x1xf32> to vector<16x16xf32>
    %93 = arith.mulf %88, %92 : vector<16x16xf32>
    %94 = arith.truncf %93 : vector<16x16xf32> to vector<16x16xbf16>
    %cst_29 = arith.constant dense<0.000000e+00> : vector<16x32xf32>
    %95 = tpu.matmul %87, %73, %cst_29 {dimension_numbers = #tpu.dot_dimension_numbers<[1], [0], [0], [1], [0, 0, 1, 1], [], []>} : vector<16x16xbf16>, vector<16x32xbf16>, vector<16x32xf32> -> vector<16x32xf32>
    %cst_30 = arith.constant dense<0.000000e+00> : vector<16x32xf32>
    %96 = tpu.matmul %94, %71, %cst_30 {dimension_numbers = #tpu.dot_dimension_numbers<[1], [0], [0], [1], [0, 0, 1, 1], [], []>} : vector<16x16xbf16>, vector<16x32xbf16>, vector<16x32xf32> -> vector<16x32xf32>
    %97 = vector.extract_strided_slice %12 {offsets = [0, 96], sizes = [16, 32], strides = [1, 1]} : vector<16x128xbf16> to vector<16x32xbf16>
    %98 = vector.extract_strided_slice %13 {offsets = [0, 96], sizes = [16, 32], strides = [1, 1]} : vector<16x128xbf16> to vector<16x32xbf16>
    %99 = vector.extract_strided_slice %14 {offsets = [0, 96], sizes = [16, 32], strides = [1, 1]} : vector<16x128xbf16> to vector<16x32xbf16>
    %100 = vector.extract_strided_slice %15 {offsets = [0, 96], sizes = [16, 32], strides = [1, 1]} : vector<16x128xbf16> to vector<16x32xbf16>
    %cst_31 = arith.constant dense<0.000000e+00> : vector<16x16xf32>
    %101 = tpu.matmul %97, %99, %cst_31 {dimension_numbers = #tpu.dot_dimension_numbers<[1], [1], [0], [0], [0, 0, 1, 0], [], []>} : vector<16x32xbf16>, vector<16x32xbf16>, vector<16x16xf32> -> vector<16x16xf32>
    %cst_32 = arith.constant dense<0xFF800000> : vector<16xf32>
    %102 = vector.multi_reduction <maximumf>, %101, %cst_32 [1] : vector<16x16xf32> to vector<16xf32>
    %103 = vector.shape_cast %102 : vector<16xf32> to vector<16x1xf32>
    %cst_33 = arith.constant dense<0xFF800000> : vector<1xf32>
    %104 = vector.multi_reduction <maximumf>, %103, %cst_33 [0] : vector<16x1xf32> to vector<1xf32>
    %105 = vector.shape_cast %104 : vector<1xf32> to vector<1x1xf32>
    %106 = vector.broadcast %105 : vector<1x1xf32> to vector<16x16xf32>
    %107 = arith.subf %101, %106 : vector<16x16xf32>
    %108 = math.exp %107 : vector<16x16xf32>
    %cst_34 = arith.constant dense<0.000000e+00> : vector<16xf32>
    %109 = vector.multi_reduction <add>, %108, %cst_34 [1] : vector<16x16xf32> to vector<16xf32>
    %110 = vector.shape_cast %109 : vector<16xf32> to vector<16x1xf32>
    %111 = tpu.reciprocal %110 {approx = true} : vector<16x1xf32> -> vector<16x1xf32>
    %112 = vector.broadcast %111 : vector<16x1xf32> to vector<16x16xf32>
    %113 = arith.mulf %108, %112 : vector<16x16xf32>
    %114 = arith.truncf %113 : vector<16x16xf32> to vector<16x16xbf16>
    %115 = tpu.transpose %108, [1, 0] : vector<16x16xf32> -> vector<16x16xf32>
    %cst_35 = arith.constant dense<0.000000e+00> : vector<16xf32>
    %116 = vector.multi_reduction <add>, %115, %cst_35 [1] : vector<16x16xf32> to vector<16xf32>
    %117 = vector.shape_cast %116 : vector<16xf32> to vector<16x1xf32>
    %118 = tpu.reciprocal %117 {approx = true} : vector<16x1xf32> -> vector<16x1xf32>
    %119 = vector.broadcast %118 : vector<16x1xf32> to vector<16x16xf32>
    %120 = arith.mulf %115, %119 : vector<16x16xf32>
    %121 = arith.truncf %120 : vector<16x16xf32> to vector<16x16xbf16>
    %cst_36 = arith.constant dense<0.000000e+00> : vector<16x32xf32>
    %122 = tpu.matmul %114, %100, %cst_36 {dimension_numbers = #tpu.dot_dimension_numbers<[1], [0], [0], [1], [0, 0, 1, 1], [], []>} : vector<16x16xbf16>, vector<16x32xbf16>, vector<16x32xf32> -> vector<16x32xf32>
    %cst_37 = arith.constant dense<0.000000e+00> : vector<16x32xf32>
    %123 = tpu.matmul %121, %98, %cst_37 {dimension_numbers = #tpu.dot_dimension_numbers<[1], [0], [0], [1], [0, 0, 1, 1], [], []>} : vector<16x16xbf16>, vector<16x32xbf16>, vector<16x32xf32> -> vector<16x32xf32>
    %124 = tpu.concatenate %41, %68, %95, %122, %42, %69, %96, %123 in 1 : vector<16x32xf32>, vector<16x32xf32>, vector<16x32xf32>, vector<16x32xf32>, vector<16x32xf32>, vector<16x32xf32>, vector<16x32xf32>, vector<16x32xf32> -> vector<16x256xf32>
    %125 = arith.truncf %124 : vector<16x256xf32> to vector<16x256xbf16>
    %c0_38 = arith.constant 0 : index
    %c0_39 = arith.constant 0 : index
    %126 = vector.load %arg5[%c0_38, %c0_39] : memref<256x128xbf16, #tpu.memory_space<vmem>>, vector<256x128xbf16>
    %cst_40 = arith.constant dense<0.000000e+00> : vector<16x128xf32>
    %127 = tpu.matmul %125, %126, %cst_40 {dimension_numbers = #tpu.dot_dimension_numbers<[1], [0], [0], [1], [0, 0, 1, 1], [], []>} : vector<16x256xbf16>, vector<256x128xbf16>, vector<16x128xf32> -> vector<16x128xf32>
    %c0_41 = arith.constant 0 : index
    %c0_42 = arith.constant 0 : index
    %128 = vector.load %arg6[%c0_41, %c0_42] : memref<1x128xf32, #tpu.memory_space<vmem>>, vector<1x128xf32>
    %129 = vector.broadcast %128 : vector<1x128xf32> to vector<16x128xf32>
    %130 = arith.addf %127, %129 : vector<16x128xf32>
    %cst_43 = arith.constant dense<0.000000e+00> : vector<16xf32>
    %131 = vector.multi_reduction <add>, %130, %cst_43 [1] : vector<16x128xf32> to vector<16xf32>
    %132 = vector.shape_cast %131 : vector<16xf32> to vector<16x1xf32>
    %cst_44 = arith.constant 1.280000e+02 : f32
    %133 = vector.broadcast %cst_44 : f32 to vector<16x1xf32>
    %134 = arith.divf %132, %133 : vector<16x1xf32>
    %135 = vector.broadcast %134 : vector<16x1xf32> to vector<16x128xf32>
    %136 = arith.subf %130, %135 : vector<16x128xf32>
    %137 = arith.mulf %136, %136 : vector<16x128xf32>
    %cst_45 = arith.constant dense<0.000000e+00> : vector<16xf32>
    %138 = vector.multi_reduction <add>, %137, %cst_45 [1] : vector<16x128xf32> to vector<16xf32>
    %139 = vector.shape_cast %138 : vector<16xf32> to vector<16x1xf32>
    %cst_46 = arith.constant 1.280000e+02 : f32
    %140 = vector.broadcast %cst_46 : f32 to vector<16x1xf32>
    %141 = arith.divf %139, %140 : vector<16x1xf32>
    %cst_47 = arith.constant 9.99999974E-6 : f32
    %142 = vector.broadcast %cst_47 : f32 to vector<16x1xf32>
    %143 = arith.addf %141, %142 : vector<16x1xf32>
    %144 = math.rsqrt %143 : vector<16x1xf32>
    %145 = vector.broadcast %144 : vector<16x1xf32> to vector<16x128xf32>
    %146 = arith.mulf %136, %145 : vector<16x128xf32>
    %c0_48 = arith.constant 0 : index
    %c0_49 = arith.constant 0 : index
    %147 = vector.load %arg7[%c0_48, %c0_49] : memref<1x128xf32, #tpu.memory_space<vmem>>, vector<1x128xf32>
    %148 = vector.broadcast %147 : vector<1x128xf32> to vector<16x128xf32>
    %149 = arith.mulf %146, %148 : vector<16x128xf32>
    %c0_50 = arith.constant 0 : index
    %c0_51 = arith.constant 0 : index
    %150 = vector.load %arg8[%c0_50, %c0_51] : memref<1x128xf32, #tpu.memory_space<vmem>>, vector<1x128xf32>
    %151 = vector.broadcast %150 : vector<1x128xf32> to vector<16x128xf32>
    %152 = arith.addf %149, %151 : vector<16x128xf32>
    %153 = arith.addf %152, %1 : vector<16x128xf32>
    %154 = arith.addf %153, %3 : vector<16x128xf32>
    %c0_52 = arith.constant 0 : index
    %c0_53 = arith.constant 0 : index
    %c0_54 = arith.constant 0 : index
    %155 = vector.load %arg9[%c0_52, %c0_53, %c0_54] : memref<1x16x128xf32, #tpu.memory_space<vmem>>, vector<1x16x128xf32>
    %156 = vector.shape_cast %155 : vector<1x16x128xf32> to vector<16x128xf32>
    %157 = vector.shape_cast %154 : vector<16x128xf32> to vector<1x16x128xf32>
    tpu.vector_store %arg9[%c0_52, %c0_53, %c0_54], %157 {strides = array<i32>} : memref<1x16x128xf32, #tpu.memory_space<vmem>>, vector<1x16x128xf32>,
    return
  }
  func.func @transform_0(%arg0: i32) -> (i32, i32, i32) {
    %c0_i32 = arith.constant 0 : i32
    %c0_i32_0 = arith.constant 0 : i32
    %c0_i32_1 = arith.constant 0 : i32
    return %arg0, %c0_i32, %c0_i32_0 : i32, i32, i32
  }
  func.func @transform_1(%arg0: i32) -> (i32, i32, i32) {
    %c0_i32 = arith.constant 0 : i32
    %c0_i32_0 = arith.constant 0 : i32
    %c0_i32_1 = arith.constant 0 : i32
    return %arg0, %c0_i32, %c0_i32_0 : i32, i32, i32
  }
  func.func @transform_2(%arg0: i32) -> (i32, i32) {
    %c0_i32 = arith.constant 0 : i32
    %c0_i32_0 = arith.constant 0 : i32
    %c0_i32_1 = arith.constant 0 : i32
    return %c0_i32, %c0_i32_0 : i32, i32
  }
  func.func @transform_3(%arg0: i32) -> (i32, i32) {
    %c0_i32 = arith.constant 0 : i32
    %c0_i32_0 = arith.constant 0 : i32
    %c0_i32_1 = arith.constant 0 : i32
    return %c0_i32, %c0_i32_0 : i32, i32
  }
  func.func @transform_4(%arg0: i32) -> (i32, i32) {
    %c0_i32 = arith.constant 0 : i32
    %c0_i32_0 = arith.constant 0 : i32
    %c0_i32_1 = arith.constant 0 : i32
    return %c0_i32, %c0_i32_0 : i32, i32
  }
  func.func @transform_5(%arg0: i32) -> (i32, i32) {
    %c0_i32 = arith.constant 0 : i32
    %c0_i32_0 = arith.constant 0 : i32
    %c0_i32_1 = arith.constant 0 : i32
    return %c0_i32, %c0_i32_0 : i32, i32
  }
  func.func @transform_6(%arg0: i32) -> (i32, i32) {
    %c0_i32 = arith.constant 0 : i32
    %c0_i32_0 = arith.constant 0 : i32
    %c0_i32_1 = arith.constant 0 : i32
    return %c0_i32, %c0_i32_0 : i32, i32
  }
  func.func @transform_7(%arg0: i32) -> (i32, i32) {
    %c0_i32 = arith.constant 0 : i32
    %c0_i32_0 = arith.constant 0 : i32
    %c0_i32_1 = arith.constant 0 : i32
    return %c0_i32, %c0_i32_0 : i32, i32
  }
  func.func @transform_8(%arg0: i32) -> (i32, i32, i32) {
    %c0_i32 = arith.constant 0 : i32
    %c0_i32_0 = arith.constant 0 : i32
    %c0_i32_1 = arith.constant 0 : i32
    return %arg0, %c0_i32, %c0_i32_0 : i32, i32, i32
  }
}

</mosaic_0001>

<bundles_post_ra>
// kernel: tpu_custom_call.1
= control target key start
LH: loop header
LB: loop body
LE: loop exit
PB: predicated region body
PF: predicated region fallthrough
CT: control target
= control target key end

     0   :  { %s3170_s0 = inlined_call_operand.hbm [shape: f32[2,16,128], index: 0, kind: input, shape index: {}]   ;;  %s3171_s1 = inlined_call_operand.hbm [shape: f32[2,16,128], index: 1, kind: input, shape index: {}]   ;;  %s3172_s2 = inlined_call_operand.hbm [shape: bf16[128,256], index: 2, kind: input, shape index: {}]   ;;  %s3173_s3 = inlined_call_operand.hbm [shape: bf16[128,256], index: 3, kind: input, shape index: {}]   ;;  %s3174_s4 = inlined_call_operand.hbm [shape: bf16[256,128], index: 4, kind: input, shape index: {}]   ;;  %s3175_s5 = inlined_call_operand.vmem [shape: f32[1,128], index: 5, kind: input, shape index: {}]   ;;  %s3176_s6 = inlined_call_operand.vmem [shape: f32[1,128], index: 6, kind: input, shape index: {}]   ;;  %s3177_s7 = inlined_call_operand.vmem [shape: f32[1,128], index: 7, kind: input, shape index: {}]   ;;  %s3178_s8 = inlined_call_operand.hbm [shape: f32[2,16,128], index: 8, kind: output, shape index: {}]  }
   0x1   :  { %3189 = sst [smem:[#allocation20_spill]] %s3170_s0 }
   0x2   :  { %3190 = sst [smem:[#allocation21_spill]] %s3172_s2 }
   0x3   :  { %3191 = sst [smem:[#allocation22_spill]] %s3173_s3 }
   0x4   :  { %3192 = sst [smem:[#allocation23_spill]] %s3174_s4 }
   0x5   :  { %13 = vsyncpa [#allocation3], 0 }
   0x6   :  { %15 = vsyncpa [#allocation3 + $0x1], 0 }
   0x7   :  { %16 = vsyncpa [#allocation6], 0 }
   0x8   :  { %18 = vsyncpa [#allocation6 + $0x1], 0 }
   0x9   :  { %19 = vsyncpa [#allocation9], 0 }
   0xa   :  { %20 = vsyncpa [#allocation4], 0 }
   0xb   :  { %22 = vsyncpa [#allocation4 + $0x1], 0  ;;  %s2713_s27 = smov 0   ;;  %s2715_s28 = smov 0  }
   0xc   :  { %s2717_s29 = smov 0   ;;  %s2719_s30 = smov 0  }
   0xd LB: > { %3193 = sst [smem:[#allocation17_spill]] %s2644_s29  ;;  %s2734_s9 = sadd.s32 4294967295, %s2648_s30   ;;  %s2648_s30 = sphi %s2719_s30, %s3216_s30   ;;  %s2644_s29 = sphi %s2717_s29, %s3218_s29   ;;  %s2640_s28 = sphi %s2715_s28, %s3220_s28   ;;  %s2636_s27 = sphi %s2713_s27, %s3219_s27  }
   0xe   : > { %s1989_s10 = sadd.s32 4294967294, %s2648_s30   ;;  %p48_p0 = scmp.ne.s32.totalorder %s2640_s28, %s2636_s27 }
   0xf   : > { %p3179_p1 = scmp.eq.s32.totalorder %s2734_s9, 0  ;;  %p224_p2 = scmp.eq.s32.totalorder %s2734_s9, 1 }
  0x10   : > { %p230_p3 = scmp.eq.s32.totalorder %s1989_s10, 1  ;;  %p1990_p5 = scmp.ge.s32.totalorder %s2648_s30, 1 }
  0x11   : > { %p2743_p4 = por %p3179_p1, %p48_p0  ;;  %p237_p7 = scmp.lt.s32.totalorder %s2648_s30, 3 }
  0x12   : > { %p2748_p6 = por %p230_p3, %p48_p0  ;;  %s2650_s14 = smov [#allocation7]  }
  0x13   : > { %s3194_s11 = scalar_select %p2743_p4, 1, 0 }
  0x14   : > { %s3195_s12 = scalar_select %p2748_p6, 1, 0 }
  0x15   : > { %p2753_p8 = pnand %p1990_p5, %p237_p7  ;;  %s249_s15 = sshll.u32 %s2650_s14, 4  ;;  %s250_s15 = int_to_ptr.vmem [resolvable:$true] %s249_s15 }
  0x16   : > { %s2651_s17 = smov [#allocation8]   ;;  %s2652_s19 = smov [#allocation10]  }
  0x17   : > { %p2215_p9 = pneg %p2753_p8  ;;  %s262_s18 = sshll.u32 %s2651_s17, 4  ;;  %s263_s18 = int_to_ptr.vmem [resolvable:$true] %s262_s18 }
  0x18   : > { %s275_s20 = sshll.u32 %s2652_s19, 4  ;;  %s2449_s21 = scalar_lea.vmem %s250_s15, 2048  ;;  %s276_s20 = int_to_ptr.vmem [resolvable:$true] %s275_s20 }
  0x19   : > { %p2762_p11 = pnand %p2215_p9, %p3179_p1  ;;  %p2450_p13 = scmp.ne.s32.totalorder %s250_s15, %s2449_s21 }
  0x1a   : > { %p2457_p5 = scmp.lt.s32.totalorder %s250_s15, %s250_s15  ;;  %p2458_p7 = scmp.lt.s32.totalorder %s2449_s21, %s2449_s21 }
  0x1b   : > { %p2440_p12 = pneg %p2762_p11 }
  0x1c   : > { %p2459_p9 = por %p2458_p7, %p2457_p5 }
  0x1d   : > { %p2452_p0 = pnand %p2450_p13, %p2440_p12 }
  0x1f   : > { %p2453_p3 = pneg %p2452_p0 }
  0x21   : > { %p2460_p10 = pnand %p2459_p9, %p2453_p3 }
  0x23   : > { %2463 = shalt.err (!%p2460_p10)
}
  0x24   : > { %s3180_s22 = smov 128   ;;  %s3182_s23 = smov 8  }
  0x25   : > { %s3198_s2 = sld [smem:[#allocation21_spill]]  ;;  %s2475_s26 = scalar_lea.vmem %s263_s18, 2048 }
  0x26   : > { %p2476_p13 = scmp.ne.s32.totalorder %s263_s18, %s2475_s26  ;;  %p2483_p3 = scmp.lt.s32.totalorder %s263_s18, %s263_s18 }
  0x27   : > { %p2484_p10 = scmp.lt.s32.totalorder %s2475_s26, %s2475_s26 }
  0x28   : > { %p2478_p0 = pnand %p2476_p13, %p2440_p12 }
  0x29   : > { %p2485_p7 = por %p2484_p10, %p2483_p3 }
  0x2a   : > { %p2479_p5 = pneg %p2478_p0 }
  0x2b   : > { %2218 = dma.hbm_to_vmem [thread:$0]  (!%p2762_p11), %s3198_s2, 2048, %s250_s15, [#allocation6], %s3180_s22, %s3180_s22, %s3182_s23  }
  0x2c   : > { %p2486_p9 = pnand %p2485_p7, %p2479_p5 }
  0x2e   : > { %2489 = shalt.err (!%p2486_p9)
}
  0x2f   : > { %s3199_s3 = sld [smem:[#allocation22_spill]]  ;;  %s2501_s15 = scalar_lea.vmem %s276_s20, 2048 }
  0x30   : > { %p2502_p1 = scmp.ne.s32.totalorder %s276_s20, %s2501_s15  ;;  %p2509_p3 = scmp.lt.s32.totalorder %s276_s20, %s276_s20 }
  0x31   : > { %p2510_p5 = scmp.lt.s32.totalorder %s2501_s15, %s2501_s15 }
  0x32   : > { %p2504_p13 = pnand %p2502_p1, %p2440_p12 }
  0x33   : > { %p2511_p10 = por %p2510_p5, %p2509_p3 }
  0x34   : > { %p2505_p0 = pneg %p2504_p13 }
  0x35   : > { %2221 = dma.hbm_to_vmem [thread:$0]  (!%p2762_p11), %s3199_s3, 2048, %s263_s18, [#allocation9], %s3180_s22, %s3180_s22, %s3182_s23  }
  0x36   : > { %p2512_p7 = pnand %p2511_p10, %p2505_p0 }
  0x38   : > { %2515 = shalt.err (!%p2512_p7)
}
  0x39   : > { %s2655_s17 = smov 64   ;;  %s2656_s18 = smov 4  }
  0x3a   : > { %s3200_s4 = sld [smem:[#allocation23_spill]]  ;;  %s2799_s24 = sadd.s32 1, %s2648_s30  }
  0x3b   : > { %3201 = sst [smem:[#allocation18_spill]] %s2799_s24  ;;  %s32_s25 = ssub.s32 %s2648_s30, %s2799_s24 }
  0x3c   : > { %s35_s26 = sadd.s32 1, %s2644_s29  ;;  %p33_p1 = scmp.eq.s32.totalorder %s32_s25, 0 }
  0x3d   : > { %p42_p12 = scmp.ne.s32.totalorder %s2644_s29, %s2640_s28  ;;  %p43_p9 = scmp.eq.s32.totalorder %s2648_s30, 0 }
  0x3e   : > { %p2239_p13 = scmp.lt.s32.totalorder %s2648_s30, 2  ;;  %s298_s16 = sand.u32 1, %s2644_s29  }
  0x3f   : > { %s2809_s10 = scalar_select %p33_p1, %s2644_s29, %s35_s26  }
  0x40   : > { %2224 = dma.hbm_to_vmem [thread:$0]  (!%p2762_p11), %s3200_s4, 2048, %s276_s20, [#allocation9], %s2655_s17, %s2655_s17, %s2656_s18  }
  0x41   : > { %3202 = sst [smem:[#allocation19_spill]] %s2809_s10  ;;  %p44_p0 = por %p43_p9, %p42_p12 }
  0x42   : > { %p2813_p3 = por %p224_p2, %p42_p12  ;;  %s2076_s15 = sshll.u32 %s2648_s30, 8 }
  0x43   : > { %s2819_s20 = sshll.u32 %s298_s16, 4  ;;  %s3204_s0 = sld [smem:[#allocation20_spill]] }
  0x44   : > { %s3203_s14 = scalar_select %p2813_p3, 1, 0 }
  0x45   : > { %s302_s21 = scalar_lea.vmem [#allocation2], %s2819_s20  ;;  %p2827_p11 = pnand %p2239_p13, %p44_p0 }
  0x46   : > { %s309_s25 = sshll.u32 %s302_s21, 4  ;;  %s2836_s17 = scalar_lea.hbm %s3171_s1, %s2076_s15  ;;  %s2831_s25 = int_to_ptr.vmem [resolvable:$true] %s309_s25 }
  0x47   : > { %s2838_s18 = scalar_lea.sflag [#allocation3], %s298_s16  ;;  %p2518_p5 = pneg %p2827_p11 }
  0x49   : > { %s2824_s19 = scalar_lea.hbm %s3204_s0, %s2076_s15  ;;  %s2521_s4 = scalar_lea.hbm %s3204_s0, 512 }
  0x4a   : > { %s2516_s2 = scalar_lea.hbm %s2824_s19, 256  ;;  %p2522_p1 = scmp.lt.s32.totalorder %s2824_s19, %s3204_s0 }
  0x4b   : > { %p2517_p2 = scmp.ne.s32.totalorder %s2824_s19, %s2516_s2  ;;  %p2523_p12 = scmp.lt.s32.totalorder %s2521_s4, %s2516_s2 }
  0x4d   : > { %p2519_p10 = pnand %p2518_p5, %p2517_p2  ;;  %p2524_p9 = por %p2523_p12, %p2522_p1 }
  0x4f   : > { %p2520_p7 = pneg %p2519_p10 }
  0x51   : > { %p2525_p13 = pnand %p2524_p9, %p2520_p7 }
  0x53   : > { %2528 = shalt.err (!%p2525_p13)
}
  0x54   : > { %s2529_s22 = scalar_lea.vmem %s2831_s25, 256  ;;  %s2657_s3 = smov [#allocation2]  }
  0x55   : > { %p2530_p0 = scmp.ne.s32.totalorder %s2831_s25, %s2529_s22  ;;  %s2534_s23 = sshll.u32 %s2657_s3, 4  ;;  %s2535_s23 = int_to_ptr.vmem [resolvable:$false] %s2534_s23 }
  0x56   : > { %s2536_s16 = scalar_lea.vmem %s2535_s23, 512  ;;  %p2537_p6 = scmp.lt.s32.totalorder %s2831_s25, %s2535_s23 }
  0x57   : > { %p2532_p2 = pnand %p2530_p0, %p2518_p5  ;;  %p2538_p3 = scmp.lt.s32.totalorder %s2536_s16, %s2529_s22 }
  0x59   : > { %p2533_p10 = pneg %p2532_p2  ;;  %p2539_p4 = por %p2538_p3, %p2537_p6 }
  0x5b   : > { %p2540_p1 = pnand %p2539_p4, %p2533_p10 }
  0x5d   : > { %2543 = shalt.err (!%p2540_p1)
}
  0x5e   : > { %s3206_s2 = smov 8   ;;  %s3207_s4 = smov 128  }
  0x5f   : > { %2228 = dma.hbm_to_vmem [thread:$0]  (!%p2827_p11), %s2824_s19, 256, %s2831_s25, %s2838_s18, %s3207_s4, %s3207_s4, %s3206_s2  }
  0x60   : > { %s323_s29 = scalar_lea.vmem [#allocation5], %s2819_s20  ;;  %s319_s15 = sand.u32 1, %s2648_s30  }
  0x61   : > { %s330_s10 = sshll.u32 %s323_s29, 4  ;;  %s320_s21 = scalar_lea.sflag [#allocation6], %s319_s15  ;;  %s2870_s10 = int_to_ptr.vmem [resolvable:$true] %s330_s10 }
  0x62   : > { %s2544_s22 = scalar_lea.hbm %s2836_s17, 256  ;;  %s2549_s16 = scalar_lea.hbm %s3171_s1, 512 }
  0x63   : > { %p2545_p4 = scmp.ne.s32.totalorder %s2836_s17, %s2544_s22  ;;  %p2550_p7 = scmp.lt.s32.totalorder %s2836_s17, %s3171_s1 }
  0x64   : > { %p2551_p12 = scmp.lt.s32.totalorder %s2549_s16, %s2544_s22 }
  0x65   : > { %p2547_p6 = pnand %p2545_p4, %p2518_p5 }
  0x66   : > { %p2552_p9 = por %p2551_p12, %p2550_p7 }
  0x67   : > { %p2548_p3 = pneg %p2547_p6 }
  0x69   : > { %p2553_p13 = pnand %p2552_p9, %p2548_p3 }
  0x6b   : > { %2556 = shalt.err (!%p2553_p13)
}
  0x6c   : > { %s2557_s20 = scalar_lea.vmem %s2870_s10, 256  ;;  %s2658_s19 = smov [#allocation5]  }
  0x6d   : > { %p2558_p0 = scmp.ne.s32.totalorder %s2870_s10, %s2557_s20  ;;  %s2562_s25 = sshll.u32 %s2658_s19, 4  ;;  %s2563_s25 = int_to_ptr.vmem [resolvable:$false] %s2562_s25 }
  0x6e   : > { %s2564_s18 = scalar_lea.vmem %s2563_s25, 512  ;;  %p2565_p1 = scmp.lt.s32.totalorder %s2870_s10, %s2563_s25 }
  0x6f   : > { %p2560_p2 = pnand %p2558_p0, %p2518_p5  ;;  %p2566_p4 = scmp.lt.s32.totalorder %s2564_s18, %s2557_s20 }
  0x71   : > { %p2561_p10 = pneg %p2560_p2  ;;  %p2567_p6 = por %p2566_p4, %p2565_p1 }
  0x73   : > { %p2568_p7 = pnand %p2567_p6, %p2561_p10 }
  0x75   : > { %2571 = shalt.err (!%p2568_p7)
}
  0x76   : > { %2231 = dma.hbm_to_vmem [thread:$0]  (!%p2827_p11), %s2836_s17, 256, %s2870_s10, %s320_s21, %s3207_s4, %s3207_s4, %s3206_s2  }
  0x77   : > { %342 = sbr.rel (%p2753_p8) target bundleno = 3671 (0xe57), region = 52  ;;  %s2900_s0 = sand.u32 (!%p2753_p8), 1, %s2640_s28  }
  0x78   : > { %s2903_s24 = sshll.u32 (!%p2753_p8), %s2900_s0, 4  ;;  %s345_s29 = scalar_lea.sflag (!%p2753_p8), [#allocation3], %s2900_s0 }
  0x79   : > { %s348_s26 = scalar_lea.vmem (!%p2753_p8), [#allocation2], %s2903_s24  ;;  %p3208_p5 = scmp.ne.s32.totalorder (!%p2753_p8), %s3194_s11, 0 }
  0x7c   : > { %2615 = dma.done.wait (%p3208_p5), %s345_s29, 256  }
  0x7d   : > { %2617 = vsyncadd (%p3208_p5), %s345_s29, 4294967040  ;;  %s353_s13 = sand.u32 1, %s2734_s9   ;;  %s2913_s2 = scalar_lea.vmem [#allocation5], %s2903_s24 }
  0x7e   : > { %s354_s17 = scalar_lea.sflag [#allocation6], %s353_s13 }
  0x7f   : > { %2619 = dma.done.wait (%p3208_p5), %s354_s17, 256  }
  0x80   : > { %2621 = vsyncadd (%p3208_p5), %s354_s17, 4294967040  ;;  %p3209_p8 = scmp.eq.s32.totalorder %s2734_s9, 0 }
  0x82   : > { %2623 = dma.done.wait (%p3209_p8), [#allocation6], 2048   ;;  %p3210_p11 = pmov %p3209_p8 }
  0x83   : > { %p3211_p3 = pmov %p3209_p8 }
  0x84   : > { %2625 = vsyncadd (%p3210_p11), [#allocation6], 4294965248 }
  0x85   : > { %2627 = dma.done.wait (%p3211_p3), [#allocation9], 4096   ;;  %p3212_p12 = pmov %p3211_p3 }
  0x86   : > { %v2659_v0 = vmov 0   ;;  %v2321_v1 = vld [vmem:[#allocation8 + $0x74] ss:$8 sps:$4 sm:$0xff]   ;;  %v2323_v2 = vld [vmem:[#allocation8 + $0x70] ss:$8 sps:$4 sm:$0xff]   ;;  %v2660_v39 = vmov 0.0  }
  0x87   : > { %2629 = vsyncadd (%p3212_p12), [#allocation9], 4294963200  ;;  %683 = vmatprep.mubr.bf16.mxu1 %v2659_v0  ;;  %542 = vmatprep.mubr.bf16.mxu0 %v2659_v0  ;;  %v2324_v3 = vld [vmem:[#allocation7 + $0x74] ss:$8 sps:$4 sm:$0xff]   ;;  %v2326_v4 = vld [vmem:[#allocation7 + $0x70] ss:$8 sps:$4 sm:$0xff]  }
  0x88   : > { %651 = vmatprep.subr.bf16.mxu1 %v2321_v1  ;;  %v2327_v5 = vld [vmem:[#allocation8 + $0x64] ss:$8 sps:$4 sm:$0xff]   ;;  %v2329_v6 = vld [vmem:[#allocation8 + $0x60] ss:$8 sps:$4 sm:$0xff]   ;;  %510 = vmatprep.subr.bf16.mxu0 %v2324_v3  ;;  %v2333_v9 = vld [vmem:[#allocation8 + $0x54] ss:$8 sps:$4 sm:$0xff]  }
  0x89   : > { %652 = vmatpush1.bf16.msra.mxu1 %v2323_v2  ;;  %v2330_v7 = vld [vmem:[#allocation7 + $0x64] ss:$8 sps:$4 sm:$0xff]   ;;  %511 = vmatpush1.bf16.msra.mxu0 %v2326_v4  ;;  %v2332_v8 = vld [vmem:[#allocation7 + $0x60] ss:$8 sps:$4 sm:$0xff]   ;;  %v2335_v10 = vld [vmem:[#allocation8 + $0x50] ss:$8 sps:$4 sm:$0xff]  }
  0x8a   : > { %653 = vmatprep.subr.bf16.mxu1 %v2327_v5  ;;  %512 = vmatprep.subr.bf16.mxu0 %v2330_v7  ;;  %v2336_v11 = vld [vmem:[#allocation7 + $0x54] ss:$8 sps:$4 sm:$0xff]   ;;  %v2339_v12 = vld [vmem:[#allocation8 + $0x44] ss:$8 sps:$4 sm:$0xff]   ;;  %v2338_v13 = vld [vmem:[#allocation7 + $0x50] ss:$8 sps:$4 sm:$0xff]  }
  0x8b   : > { %v2342_v14 = vld [vmem:[#allocation7 + $0x44] ss:$8 sps:$4 sm:$0xff]   ;;  %v2341_v15 = vld [vmem:[#allocation8 + $0x40] ss:$8 sps:$4 sm:$0xff]   ;;  %v2345_v16 = vld [vmem:[#allocation8 + $0x34] ss:$8 sps:$4 sm:$0xff]  }
  0x8c   : > { %v2344_v17 = vld [vmem:[#allocation7 + $0x40] ss:$8 sps:$4 sm:$0xff]   ;;  %v2348_v18 = vld [vmem:[#allocation7 + $0x34] ss:$8 sps:$4 sm:$0xff]   ;;  %v2347_v19 = vld [vmem:[#allocation8 + $0x30] ss:$8 sps:$4 sm:$0xff]  }
  0x8d   : > { %654 = vmatpush1.bf16.msra.mxu1 %v2329_v6  ;;  %513 = vmatpush1.bf16.msra.mxu0 %v2332_v8  ;;  %v2351_v20 = vld [vmem:[#allocation8 + $0x24] ss:$8 sps:$4 sm:$0xff]   ;;  %v2350_v21 = vld [vmem:[#allocation7 + $0x30] ss:$8 sps:$4 sm:$0xff]   ;;  %v2353_v23 = vld [vmem:[#allocation8 + $0x20] ss:$8 sps:$4 sm:$0xff]  }
  0x8e   : > { %655 = vmatprep.subr.bf16.mxu1 %v2333_v9  ;;  %514 = vmatprep.subr.bf16.mxu0 %v2336_v11  ;;  %v2354_v22 = vld [vmem:[#allocation7 + $0x24] ss:$8 sps:$4 sm:$0xff]   ;;  %v2357_v24 = vld [vmem:[#allocation8 + $0x14] ss:$8 sps:$4 sm:$0xff]   ;;  %v2356_v25 = vld [vmem:[#allocation7 + $0x20] ss:$8 sps:$4 sm:$0xff]  }
  0x8f   : > { %v2359_v26 = vld [vmem:[#allocation8 + $0x10] ss:$8 sps:$4 sm:$0xff]   ;;  %v2360_v27 = vld [vmem:[#allocation7 + $0x14] ss:$8 sps:$4 sm:$0xff]   ;;  %v2363_v28 = vld [vmem:[#allocation8 + $0x4] ss:$8 sps:$4 sm:$0xff]  }
  0x90   : > { %v2362_v29 = vld [vmem:[#allocation7 + $0x10] ss:$8 sps:$4 sm:$0xff]   ;;  %v2366_v30 = vld [vmem:[#allocation7 + $0x4] ss:$8 sps:$4 sm:$0xff]   ;;  %v2365_v31 = vld [vmem:[#allocation8] ss:$8 sps:$4 sm:$0xff]  }
  0x91   : > { %656 = vmatpush1.bf16.msra.mxu1 %v2335_v10  ;;  %515 = vmatpush1.bf16.msra.mxu0 %v2338_v13  ;;  %v2928_v32 = vld [vmem:[%s2913_s2] sm:$0xff]  ;;  %v411_v33 = vld [vmem:[%s2913_s2 + $0x8] sm:$0xff]  ;;  %vm2661_vm0 = vmmov 0   ;;  %vm696_vm1 = vcmask 261120   ;;  %vm744_vm2 = vcmask 130048   ;;  %s2662_s11 = smov 96  }
  0x92   : > { %657 = vmatprep.subr.bf16.mxu1 %v2339_v12  ;;  %516 = vmatprep.subr.bf16.mxu0 %v2342_v14  ;;  %v2368_v34 = vld [vmem:[#allocation7] ss:$8 sps:$4 sm:$0xff]   ;;  %v413_v37 = vpack.c.bf16 %v411_v33, %v2928_v32  ;;  %s2663_s4 = smov 64   ;;  %s2664_s10 = smov 32   ;;  %vm1614_vm3 = vcmask 523264   ;;  %vm1617_vm4 = vcmask 785408  }
  0x93   : > { %v2933_v35 = vld [vmem:[%s348_s26] sm:$0xff]  ;;  %v2937_v36 = vld [vmem:[%s348_s26 + $0x8] sm:$0xff]  ;;  %s2078_s20 = sshll.u32 %s2734_s9, 8  ;;  %s406_s19 = scalar_lea.vmem [#allocation11], %s2903_s24 }
  0x94   : > { %v412_v38 = vpack.c.bf16 %v2937_v36, %v2933_v35  ;;  %s1865_s25 = sshll.u32 %s406_s19, 4  ;;  %s3124_s26 = scalar_lea.hbm %s3178_s8, %s2078_s20  ;;  %s3126_s25 = int_to_ptr.vmem [resolvable:$true] %s1865_s25 }
  0x95   : > { %658 = vmatpush1.bf16.msra.mxu1 %v2341_v15  ;;  %517 = vmatpush1.bf16.msra.mxu0 %v2344_v17  ;;  %s1852_s13 = scalar_lea.sflag [#allocation4], %s2900_s0  ;;  %s2572_s9 = scalar_lea.vmem %s3126_s25, 256 }
  0x96   : > { %659 = vmatprep.subr.bf16.mxu1 %v2345_v16  ;;  %518 = vmatprep.subr.bf16.mxu0 %v2348_v18  ;;  %p2573_p9 = scmp.ne.s32.totalorder %s3126_s25, %s2572_s9  ;;  %p3213_p13 = scmp.ne.s32.totalorder %s3203_s14, 0 }
  0x97   : > { %s2665_s24 = smov [#allocation11]  }
  0x98   : > { %p2574_p0 = pnand %p2573_p9, %p3213_p13  ;;  %s2576_s17 = sshll.u32 %s2665_s24, 4  ;;  %s2577_s17 = int_to_ptr.vmem [resolvable:$false] %s2576_s17 }
  0x99   : > { %660 = vmatpush1.bf16.msra.mxu1 %v2347_v19  ;;  %519 = vmatpush1.bf16.msra.mxu0 %v2350_v21  ;;  %p2579_p10 = scmp.lt.s32.totalorder %s3126_s25, %s2577_s17 }
  0x9a   : > { %661 = vmatprep.subr.bf16.mxu1 %v2351_v20  ;;  %520 = vmatprep.subr.bf16.mxu0 %v2354_v22  ;;  %p2575_p2 = pneg %p2574_p0 }
  0x9d   : > { %662 = vmatpush1.bf16.msra.mxu1 %v2353_v23  ;;  %521 = vmatpush1.bf16.msra.mxu0 %v2356_v25 }
  0x9e   : > { %663 = vmatprep.subr.bf16.mxu1 %v2357_v24  ;;  %522 = vmatprep.subr.bf16.mxu0 %v2360_v27 }
  0xa1   : > { %664 = vmatpush1.bf16.msra.mxu1 %v2359_v26  ;;  %523 = vmatpush1.bf16.msra.mxu0 %v2362_v29 }
  0xa2   : > { %665 = vmatprep.subr.bf16.mxu1 %v2363_v28  ;;  %524 = vmatprep.subr.bf16.mxu0 %v2366_v30 }
  0xa5   : > { %666 = vmatpush1.bf16.msra.mxu1 %v2365_v31  ;;  %525 = vmatpush1.bf16.msra.mxu0 %v2368_v34 }
  0xa6   : > { %2125 = vmatprep.subr.bf16.mxu1 %v2660_v39  ;;  %2149 = vmatprep.subr.bf16.mxu0 %v2660_v39 }
  0xa8   : > { %684 = vmatmul.mubr.bf16.vlgmr.msra.gmra.mxu1 %v413_v37  ;;  %543 = vmatmul.mubr.bf16.vlgmr.msra.gmra.mxu0 %v412_v38 }
  0xa9   : > { %2127 = vmatprep.mubr.msk.bf16.mxu1 %vm2661_vm0, %v2660_v39  ;;  %2151 = vmatprep.mubr.msk.bf16.mxu0 %vm2661_vm0, %v2660_v39 }
 0x168   : > { %v685_v40 = vpop.f32.mrf.mxu1  ;;  %v544_v42 = vpop.f32.mrf.mxu0 }
 0x16a   : > { %v687_v41 = vpop.f32.mrf.mxu1  ;;  %v546_v46 = vpop.f32.mrf.mxu0 }
 0x16c   : > { %v689_v43 = vpop.f32.mrf.mxu1  ;;  %v548_v48 = vpop.f32.mrf.mxu0 }
 0x16d   : > { %v2948_v44 = vpack.c.bf16 %v689_v43, %v685_v40  ;;  %v2953_v49 = vpack.c.bf16 %v548_v48, %v544_v42 }
 0x16e   : > { %v691_v47 = vpop.f32.mrf.mxu1  ;;  %v550_v18 = vpop.f32.mrf.mxu0 }
 0x16f   : > { %v701_v45 = vsel %vm696_vm1, %v2948_v44, 0  ;;  %v2955_v50 = vpack.c.bf16 %v691_v47, %v687_v41  ;;  %v2973_v22 = vpack.c.bf16 %v550_v18, %v546_v46 }
 0x170   : > { %2126 = vmatpush3.bf16.xpose.msra.mxu1 %v701_v45 }
 0x171   : > { %2131 = vmatprep.subr.bf16.mxu1 %v2660_v39 }
 0x177   : > { %2128 = vmatmul.mubr.msk.bf16.vlgmr.msra.gmra.mxu1 %vm696_vm1, %v2953_v49 }
 0x178   : > { %2132 = vmatpush3.bf16.msra.mxu1 %v2955_v50  ;;  %2133 = vmatprep.mubr.msk.bf16.mxu1 %vm2661_vm0, %v2660_v39 }
 0x179   : > { %2137 = vmatprep.subr.bf16.mxu1 %v2660_v39 }
 0x237   : > { %v737_v51 = vpop.f32.mrf.mxu1 }
 0x238   : > { %v745_v52 = vsel %vm744_vm2, %v737_v51, -inf }
 0x239   : > { %746 = vmax.xlane.f32.xlu0 %v745_v52  ;;  %v2129_v53 = vpop.f32.mrf.mxu1 }
 0x23b   : > { %v740_v54 = vpop.f32.mrf.mxu1 }
 0x23c   : > { %v748_v55 = vsel %vm744_vm2, %v740_v54, -inf }
 0x23d   : > { %749 = vmax.xlane.f32.xlu0 %v748_v55  ;;  %v2130_v56 = vpop.f32.mrf.mxu1 }
 0x2c2   : > { %v747_v57 = vpop.xlane.xlu0 %746 }
 0x2c6   : > { %v750_v58 = vpop.xlane.xlu0 %749 }
 0x2c7   : > { %v751_v59 = vmax.f32 %v747_v57, %v750_v58 }
 0x2c9   : > { %v752_v60 = vrot.slane %v751_v59, 4 }
 0x2cb   : > { %v753_v61 = vmax.f32 %v751_v59, %v752_v60 }
 0x2cd   : > { %v754_v62 = vrot.slane %v753_v61, 2 }
 0x2cf   : > { %v755_v63 = vmax.f32 %v753_v61, %v754_v62 }
 0x2d1   : > { %v756_v0 = vrot.slane %v755_v63, 1 }
 0x2d3   : > { %v757_v1 = vmax.f32 %v755_v63, %v756_v0 }
 0x2d5   : > { %v758_v2 = vsub.f32 %v737_v51, %v757_v1  ;;  %v759_v3 = vsub.f32 %v740_v54, %v757_v1 }
 0x2d7   : > { %v760_v4 = vmul.f32 1.442695, %v758_v2  ;;  %v762_v5 = vmul.f32 1.442695, %v759_v3 }
 0x2d9   : > { %2385 = vpow2.f32 %v760_v4 }
 0x2da   : > { %2387 = vpow2.f32 %v762_v5 }
 0x2e6   : > { %v2386_v6 = vpop.eup %2385 }
 0x2e7   : > { %775 = vxpose.xlu1.b32.start [1/2] (short) (narrow) %v2386_v6, 16  ;;  %v764_v7 = vsel %vm744_vm2, %v2386_v6, 0.0  ;;  %v2388_v8 = vpop.eup %2387 }
 0x2e8   : > { %765 = vadd.xlane.f32.xlu0 %v764_v7  ;;  %v767_v9 = vsel %vm744_vm2, %v2388_v8, 0.0 }
 0x2eb   : > { %776 = vxpose.xlu1.b32.end [2/2] (short) (narrow) %v2388_v8, 16 }
 0x312   : > { %768 = vadd.xlane.f32.xlu1 %v767_v9 }
 0x363   : > { %v791_v10 = vpop.trf.xlu1 }
 0x364   : > { %v807_v11 = vsel %vm744_vm2, %v791_v10, 0.0 }
 0x365   : > { %808 = vadd.xlane.f32.xlu0 %v807_v11 }
 0x367   : > { %v792_v12 = vpop.trf.xlu1 }
 0x368   : > { %v810_v13 = vsel %vm744_vm2, %v792_v12, 0.0 }
 0x369   : > { %811 = vadd.xlane.f32.xlu0 %v810_v13 }
 0x371   : > { %v766_v14 = vpop.xlane.xlu0 %765 }
 0x372   : > { %2389 = vrcp.f32 %v766_v14 }
 0x37f   : > { %910 = vrot.lane.b32.xlu0 %v2948_v44, %s2662_s11  ;;  %v2390_v16 = vpop.eup %2389 }
 0x380   : > { %v772_v19 = vmul.f32 %v2390_v16, %v2386_v6 }
 0x383   : > { %907 = vrot.lane.b32.xlu0 %v2953_v49, %s2662_s11 }
 0x39b   : > { %v769_v15 = vpop.xlane.xlu1 %768 }
 0x39c   : > { %2391 = vrcp.f32 %v769_v15 }
 0x3a9   : > { %v2392_v17 = vpop.eup %2391 }
 0x3aa   : > { %v773_v20 = vmul.f32 %v2392_v17, %v2388_v8 }
 0x3ac   : > { %v774_v21 = vpack.c.bf16 %v773_v20, %v772_v19 }
 0x3ae   : > { %2134 = vmatmul.mubr.msk.bf16.vlgmr.msra.gmra.mxu1 %vm744_vm2, %v774_v21 }
 0x3af   : > { %2138 = vmatpush3.bf16.msra.mxu1 %v2973_v22  ;;  %2139 = vmatprep.mubr.msk.bf16.mxu1 %vm2661_vm0, %v2660_v39 }
 0x3b0   : > { %2143 = vmatprep.subr.bf16.mxu1 %v2660_v39 }
 0x3ee   : > { %v809_v23 = vpop.xlane.xlu0 %808 }
 0x3ef   : > { %2393 = vrcp.f32 %v809_v23 }
 0x3f2   : > { %v812_v24 = vpop.xlane.xlu0 %811 }
 0x3f3   : > { %2395 = vrcp.f32 %v812_v24 }
 0x3f6   : > { %v911_v29 = vpop.permute.xlu0 %910 }
 0x3f7   : > { %v916_v31 = vsel %vm696_vm1, %v911_v29, 0 }
 0x3fa   : > { %v908_v33 = vpop.permute.xlu0 %907 }
 0x3fc   : > { %v2394_v25 = vpop.eup %2393 }
 0x3fd   : > { %v815_v27 = vmul.f32 %v2394_v25, %v791_v10 }
 0x400   : > { %v2396_v26 = vpop.eup %2395 }
 0x401   : > { %v816_v28 = vmul.f32 %v2396_v26, %v792_v12 }
 0x403   : > { %v817_v30 = vpack.c.bf16 %v816_v28, %v815_v27 }
 0x405   : > { %2140 = vmatmul.mubr.msk.bf16.vlgmr.msra.gmra.mxu1 %vm744_vm2, %v817_v30 }
 0x406   : > { %2144 = vmatpush3.bf16.xpose.msra.mxu1 %v916_v31  ;;  %2145 = vmatprep.mubr.msk.bf16.mxu1 %vm2661_vm0, %v2660_v39 }
 0x407   : > { %2155 = vmatprep.subr.bf16.mxu1 %v2660_v39 }
 0x40d   : > { %2146 = vmatmul.mubr.msk.bf16.vlgmr.msra.gmra.mxu1 %vm696_vm1, %v908_v33 }
 0x40e   : > { %2157 = vmatprep.mubr.msk.bf16.mxu1 %vm2661_vm0, %v2660_v39 }
 0x46e   : > { %v2988_v34 = vpop.f32.mrf.mxu1 }
 0x470   : > { %v2135_v37 = vpop.f32.mrf.mxu1 }
 0x472   : > { %v2990_v38 = vpop.f32.mrf.mxu1 }
 0x474   : > { %v2136_v40 = vpop.f32.mrf.mxu1 }
 0x4c5   : > { %v2992_v41 = vpop.f32.mrf.mxu1 }
 0x4c7   : > { %v2141_v42 = vpop.f32.mrf.mxu1 }
 0x4c9   : > { %v2994_v43 = vpop.f32.mrf.mxu1 }
 0x4cb   : > { %v2142_v45 = vpop.f32.mrf.mxu1 }
 0x4cd   : > { %v952_v46 = vpop.f32.mrf.mxu1 }
 0x4ce   : > { %v959_v47 = vsel %vm744_vm2, %v952_v46, -inf }
 0x4cf   : > { %960 = vmax.xlane.f32.xlu0 %v959_v47  ;;  %v2147_v48 = vpop.f32.mrf.mxu1 }
 0x4d1   : > { %v955_v51 = vpop.f32.mrf.mxu1 }
 0x4d2   : > { %v962_v52 = vsel %vm744_vm2, %v955_v51, -inf }
 0x4d3   : > { %963 = vmax.xlane.f32.xlu1 %v962_v52  ;;  %v2148_v53 = vpop.f32.mrf.mxu1 }
 0x4e4   : > { %1033 = vrot.lane.b32.xlu1 %v2955_v50, %s2662_s11 }
 0x4e5   : > { %1128 = vrot.lane.b32.xlu0 %v2953_v49, %s2663_s4 }
 0x558   : > { %v961_v54 = vpop.xlane.xlu0 %960 }
 0x55c   : > { %v964_v55 = vpop.xlane.xlu1 %963  ;;  %v1129_v17 = vpop.permute.xlu0 %1128 }
 0x55d   : > { %v965_v56 = vmax.f32 %v961_v54, %v964_v55 }
 0x55f   : > { %v966_v57 = vrot.slane %v965_v56, 4 }
 0x560   : > { %v1034_v58 = vpop.permute.xlu1 %1033 }
 0x561   : > { %v967_v59 = vmax.f32 %v965_v56, %v966_v57  ;;  %2150 = vmatpush3.bf16.msra.mxu0 %v1034_v58 }
 0x562   : > { %2161 = vmatprep.subr.bf16.mxu0 %v2660_v39 }
 0x563   : > { %v968_v60 = vrot.slane %v967_v59, 2 }
 0x565   : > { %v969_v61 = vmax.f32 %v967_v59, %v968_v60 }
 0x567   : > { %v970_v62 = vrot.slane %v969_v61, 1 }
 0x569   : > { %v971_v63 = vmax.f32 %v969_v61, %v970_v62 }
 0x56b   : > { %v972_v0 = vsub.f32 %v952_v46, %v971_v63  ;;  %v973_v1 = vsub.f32 %v955_v51, %v971_v63 }
 0x56d   : > { %v974_v2 = vmul.f32 1.442695, %v972_v0  ;;  %v976_v3 = vmul.f32 1.442695, %v973_v1 }
 0x56f   : > { %2397 = vpow2.f32 %v974_v2 }
 0x570   : > { %2399 = vpow2.f32 %v976_v3 }
 0x57c   : > { %v2398_v4 = vpop.eup %2397 }
 0x57d   : > { %v978_v5 = vsel %vm744_vm2, %v2398_v4, 0.0  ;;  %v2400_v6 = vpop.eup %2399 }
 0x57e   : > { %979 = vadd.xlane.f32.xlu1 %v978_v5  ;;  %v981_v7 = vsel %vm744_vm2, %v2400_v6, 0.0 }
 0x582   : > { %982 = vadd.xlane.f32.xlu1 %v981_v7 }
 0x593   : > { %1130 = vrot.lane.b32.xlu1 %v2948_v44, %s2663_s4 }
 0x607   : > { %v980_v8 = vpop.xlane.xlu1 %979 }
 0x608   : > { %2401 = vrcp.f32 %v980_v8 }
 0x60b   : > { %v983_v9 = vpop.xlane.xlu1 %982 }
 0x60c   : > { %2403 = vrcp.f32 %v983_v9 }
 0x60f   : > { %v1131_v14 = vpop.permute.xlu1 %1130 }
 0x610   : > { %v1136_v16 = vsel %vm696_vm1, %v1131_v14, 0 }
 0x615   : > { %v2402_v10 = vpop.eup %2401 }
 0x616   : > { %v986_v12 = vmul.f32 %v2402_v10, %v2398_v4 }
 0x619   : > { %v2404_v11 = vpop.eup %2403 }
 0x61a   : > { %v987_v13 = vmul.f32 %v2404_v11, %v2400_v6 }
 0x61c   : > { %v988_v15 = vpack.c.bf16 %v987_v13, %v986_v12 }
 0x61e   : > { %2152 = vmatmul.mubr.msk.bf16.vlgmr.msra.gmra.mxu0 %vm744_vm2, %v988_v15 }
 0x61f   : > { %2162 = vmatpush3.bf16.xpose.msra.mxu0 %v1136_v16  ;;  %2163 = vmatprep.mubr.msk.bf16.mxu0 %vm2661_vm0, %v2660_v39 }
 0x620   : > { %2173 = vmatprep.subr.bf16.mxu0 %v2660_v39 }
 0x626   : > { %2164 = vmatmul.mubr.msk.bf16.vlgmr.msra.gmra.mxu0 %vm696_vm1, %v1129_v17 }
 0x627   : > { %2175 = vmatprep.mubr.msk.bf16.mxu0 %vm2661_vm0, %v2660_v39 }
 0x6de   : > { %v3015_v18 = vpop.f32.mrf.mxu0 }
 0x6e0   : > { %v2153_v19 = vpop.f32.mrf.mxu0 }
 0x6e2   : > { %v3017_v20 = vpop.f32.mrf.mxu0 }
 0x6e3   : > { %v2296_v21 = vpack.i.bf16 %v3017_v20, %v3015_v18 }
 0x6e4   : > { %v2154_v23 = vpop.f32.mrf.mxu0 }
 0x6e6   : > { %v1172_v24 = vpop.f32.mrf.mxu0 }
 0x6e7   : > { %v1179_v25 = vsel %vm744_vm2, %v1172_v24, -inf }
 0x6e8   : > { %1180 = vmax.xlane.f32.xlu1 %v1179_v25  ;;  %v2165_v26 = vpop.f32.mrf.mxu0 }
 0x6ea   : > { %v1175_v27 = vpop.f32.mrf.mxu0 }
 0x6eb   : > { %v1182_v28 = vsel %vm744_vm2, %v1175_v27, -inf }
 0x6ec   : > { %1183 = vmax.xlane.f32.xlu0 %v1182_v28  ;;  %v2166_v29 = vpop.f32.mrf.mxu0 }
 0x71b   : > { %989 = vxpose.xlu1.b32.start [1/2] (short) (narrow) %v2398_v4, 16 }
 0x71f   : > { %990 = vxpose.xlu1.b32.end [2/2] (short) (narrow) %v2400_v6, 16 }
 0x73d   : > { %1348 = vrot.lane.b32.xlu1 %v2948_v44, %s2664_s10 }
 0x771   : > { %v1181_v30 = vpop.xlane.xlu1 %1180 }
 0x775   : > { %v1184_v37 = vpop.xlane.xlu0 %1183 }
 0x776   : > { %v1185_v45 = vmax.f32 %v1181_v30, %v1184_v37 }
 0x778   : > { %v1186_v46 = vrot.slane %v1185_v45, 4 }
 0x77a   : > { %v1187_v47 = vmax.f32 %v1185_v45, %v1186_v46 }
 0x77c   : > { %v1188_v48 = vrot.slane %v1187_v47, 2 }
 0x77e   : > { %v1189_v51 = vmax.f32 %v1187_v47, %v1188_v48 }
 0x780   : > { %v1190_v52 = vrot.slane %v1189_v51, 1 }
 0x782   : > { %v1191_v44 = vmax.f32 %v1189_v51, %v1190_v52 }
 0x784   : > { %v1192_v53 = vsub.f32 %v1172_v24, %v1191_v44  ;;  %v1193_v54 = vsub.f32 %v1175_v27, %v1191_v44 }
 0x786   : > { %v1194_v55 = vmul.f32 1.442695, %v1192_v53  ;;  %v1196_v56 = vmul.f32 1.442695, %v1193_v54 }
 0x788   : > { %2405 = vpow2.f32 %v1194_v55 }
 0x789   : > { %2407 = vpow2.f32 %v1196_v56 }
 0x795   : > { %v2406_v57 = vpop.eup %2405 }
 0x796   : > { %v1198_v58 = vsel %vm744_vm2, %v2406_v57, 0.0  ;;  %v2408_v59 = vpop.eup %2407 }
 0x797   : > { %v1005_v31 = vpop.trf.xlu1  ;;  %v1201_v60 = vsel %vm744_vm2, %v2408_v59, 0.0 }
 0x798   : > { %v1021_v33 = vsel %vm744_vm2, %v1005_v31, 0.0 }
 0x799   : > { %1022 = vadd.xlane.f32.xlu0 %v1021_v33 }
 0x79b   : > { %v1006_v40 = vpop.trf.xlu1 }
 0x79c   : > { %v1024_v42 = vsel %vm744_vm2, %v1006_v40, 0.0 }
 0x79d   : > { %1025 = vadd.xlane.f32.xlu0 %v1024_v42 }
 0x7af   : > { %v1349_v11 = vpop.permute.xlu1 %1348 }
 0x7b0   : > { %v1354_v13 = vsel %vm696_vm1, %v1349_v11, 0 }
 0x7b3   : > { %1081 = vrot.lane.b32.xlu0 %v2973_v22, %s2662_s11 }
 0x7d2   : > { %1199 = vadd.xlane.f32.xlu0 %v1198_v58 }
 0x7d6   : > { %1202 = vadd.xlane.f32.xlu0 %v1201_v60 }
 0x7ec   : > { %1252 = vrot.lane.b32.xlu0 %v2955_v50, %s2663_s4 }
 0x7f0   : > { %1346 = vrot.lane.b32.xlu0 %v2953_v49, %s2664_s10 }
 0x822   : > { %v1023_v61 = vpop.xlane.xlu0 %1022 }
 0x823   : > { %2409 = vrcp.f32 %v1023_v61 }
 0x826   : > { %v1026_v62 = vpop.xlane.xlu0 %1025 }
 0x827   : > { %2411 = vrcp.f32 %v1026_v62 }
 0x82a   : > { %v1082_v63 = vpop.permute.xlu0 %1081 }
 0x82b   : > { %2156 = vmatpush3.bf16.msra.mxu1 %v1082_v63 }
 0x82c   : > { %2167 = vmatprep.subr.bf16.mxu1 %v2660_v39 }
 0x830   : > { %v2410_v0 = vpop.eup %2409 }
 0x831   : > { %v1029_v2 = vmul.f32 %v2410_v0, %v1005_v31 }
 0x834   : > { %v2412_v1 = vpop.eup %2411 }
 0x835   : > { %v1030_v3 = vmul.f32 %v2412_v1, %v1006_v40 }
 0x837   : > { %v1031_v4 = vpack.c.bf16 %v1030_v3, %v1029_v2 }
 0x839   : > { %2158 = vmatmul.mubr.msk.bf16.vlgmr.msra.gmra.mxu1 %vm744_vm2, %v1031_v4 }
 0x83a   : > { %2169 = vmatprep.mubr.msk.bf16.mxu1 %vm2661_vm0, %v2660_v39 }
 0x85b   : > { %v1200_v5 = vpop.xlane.xlu0 %1199 }
 0x85c   : > { %2413 = vrcp.f32 %v1200_v5 }
 0x85f   : > { %v1203_v49 = vpop.xlane.xlu0 %1202 }
 0x860   : > { %2415 = vrcp.f32 %v1203_v49 }
 0x863   : > { %v1253_v6 = vpop.permute.xlu0 %1252 }
 0x864   : > { %2168 = vmatpush3.bf16.msra.mxu1 %v1253_v6 }
 0x865   : > { %2179 = vmatprep.subr.bf16.mxu1 %v2660_v39 }
 0x867   : > { %v1347_v14 = vpop.permute.xlu0 %1346 }
 0x869   : > { %v2414_v7 = vpop.eup %2413 }
 0x86a   : > { %v1206_v9 = vmul.f32 %v2414_v7, %v2406_v57 }
 0x86d   : > { %v2416_v8 = vpop.eup %2415 }
 0x86e   : > { %v1207_v10 = vmul.f32 %v2416_v8, %v2408_v59 }
 0x870   : > { %v1208_v12 = vpack.c.bf16 %v1207_v10, %v1206_v9 }
 0x872   : > { %2170 = vmatmul.mubr.msk.bf16.vlgmr.msra.gmra.mxu1 %vm744_vm2, %v1208_v12 }
 0x873   : > { %2180 = vmatpush3.bf16.xpose.msra.mxu1 %v1354_v13  ;;  %2181 = vmatprep.mubr.msk.bf16.mxu1 %vm2661_vm0, %v2660_v39 }
 0x874   : > { %2191 = vmatprep.subr.bf16.mxu1 %v2660_v39 }
 0x87a   : > { %2182 = vmatmul.mubr.msk.bf16.vlgmr.msra.gmra.mxu1 %vm696_vm1, %v1347_v14 }
 0x87b   : > { %2193 = vmatprep.mubr.msk.bf16.mxu1 %vm2661_vm0, %v2660_v39 }
 0x8f9   : > { %v3048_v15 = vpop.f32.mrf.mxu1 }
 0x8fb   : > { %v2159_v16 = vpop.f32.mrf.mxu1 }
 0x8fd   : > { %v3050_v17 = vpop.f32.mrf.mxu1 }
 0x8fe   : > { %v2291_v19 = vpack.i.bf16 %v3050_v17, %v3048_v15 }
 0x8ff   : > { %v2160_v23 = vpop.f32.mrf.mxu1 }
 0x932   : > { %v3054_v24 = vpop.f32.mrf.mxu1 }
 0x934   : > { %v2171_v25 = vpop.f32.mrf.mxu1 }
 0x936   : > { %v3056_v26 = vpop.f32.mrf.mxu1 }
 0x937   : > { %v2306_v27 = vpack.i.bf16 %v3056_v26, %v3054_v24 }
 0x938   : > { %v2172_v28 = vpop.f32.mrf.mxu1 }
 0x939   : > { %v2369_v28 = vld [vmem:[#allocation10 + $0x78] sm:$0xff]  }
 0x93a   : > { %v1390_v29 = vpop.f32.mrf.mxu1 }
 0x93b   : > { %v1397_v30 = vsel %vm744_vm2, %v1390_v29, -inf }
 0x93c   : > { %1398 = vmax.xlane.f32.xlu0 %v1397_v30  ;;  %v2183_v31 = vpop.f32.mrf.mxu1  ;;  %v2371_v30 = vld [vmem:[#allocation10 + $0x70] sm:$0xff]  }
 0x93e   : > { %v1393_v33 = vpop.f32.mrf.mxu1 }
 0x93f   : > { %v1400_v37 = vsel %vm744_vm2, %v1393_v33, -inf }
 0x940   : > { %1401 = vmax.xlane.f32.xlu1 %v1400_v37  ;;  %v2184_v40 = vpop.f32.mrf.mxu1 }
 0x941   : > { %v2374_v40 = vld [vmem:[#allocation10 + $0x28] sm:$0xff]  }
 0x969   : > { %1209 = vxpose.xlu0.b32.start [1/2] (short) (narrow) %v2406_v57, 16 }
 0x96d   : > { %1210 = vxpose.xlu0.b32.end [2/2] (short) (narrow) %v2408_v59, 16 }
 0x9c5   : > { %v1399_v42 = vpop.xlane.xlu0 %1398 }
 0x9c9   : > { %v1402_v45 = vpop.xlane.xlu1 %1401 }
 0x9ca   : > { %v1403_v46 = vmax.f32 %v1399_v42, %v1402_v45  ;;  %v2375_v45 = vld [vmem:[#allocation10 + $0x60] sm:$0xff]  }
 0x9cc   : > { %v1404_v47 = vrot.slane %v1403_v46, 4 }
 0x9ce   : > { %v1405_v48 = vmax.f32 %v1403_v46, %v1404_v47 }
 0x9d0   : > { %v1406_v51 = vrot.slane %v1405_v48, 2 }
 0x9d2   : > { %v1407_v52 = vmax.f32 %v1405_v48, %v1406_v51  ;;  %v2376_v48 = vld [vmem:[#allocation10 + $0x20] sm:$0xff]   ;;  %v2377_v51 = vld [vmem:[#allocation10 + $0x58] sm:$0xff]  }
 0x9d4   : > { %v1408_v44 = vrot.slane %v1407_v52, 1 }
 0x9d6   : > { %v1409_v53 = vmax.f32 %v1407_v52, %v1408_v44  ;;  %v2378_v52 = vld [vmem:[#allocation10 + $0x18] sm:$0xff]   ;;  %v2379_v44 = vld [vmem:[#allocation10 + $0x50] sm:$0xff]  }
 0x9d8   : > { %v1410_v54 = vsub.f32 %v1390_v29, %v1409_v53  ;;  %v1411_v55 = vsub.f32 %v1393_v33, %v1409_v53  ;;  %v2370_v29 = vld [vmem:[#allocation10 + $0x38] sm:$0xff]   ;;  %v2373_v33 = vld [vmem:[#allocation10 + $0x68] sm:$0xff]   ;;  %v2380_v53 = vld [vmem:[#allocation10 + $0x10] sm:$0xff]  }
 0x9da   : > { %v1412_v56 = vmul.f32 1.442695, %v1410_v54  ;;  %v1414_v58 = vmul.f32 1.442695, %v1411_v55  ;;  %v2381_v54 = vld [vmem:[#allocation10 + $0x48] sm:$0xff]  }
 0x9dc   : > { %2417 = vpow2.f32 %v1412_v56  ;;  %v2382_v56 = vld [vmem:[#allocation10 + $0x8] sm:$0xff]  }
 0x9dd   : > { %2419 = vpow2.f32 %v1414_v58 }
 0x9e5   : > { %v1225_v60 = vpop.trf.xlu0 }
 0x9e6   : > { %v1241_v61 = vsel %vm744_vm2, %v1225_v60, 0.0 }
 0x9e7   : > { %1242 = vadd.xlane.f32.xlu0 %v1241_v61 }
 0x9e9   : > { %v2418_v57 = vpop.eup %2417  ;;  %v1226_v0 = vpop.trf.xlu0 }
 0x9ea   : > { %1427 = vxpose.xlu1.b32.start [1/2] (short) (narrow) %v2418_v57, 16  ;;  %v1416_v59 = vsel %vm744_vm2, %v2418_v57, 0.0  ;;  %v2420_v62 = vpop.eup %2419  ;;  %v1244_v1 = vsel %vm744_vm2, %v1226_v0, 0.0 }
 0x9eb   : > { %1417 = vadd.xlane.f32.xlu0 %v1416_v59  ;;  %v1419_v63 = vsel %vm744_vm2, %v2420_v62, 0.0  ;;  %v2384_v59 = vld [vmem:[#allocation10] sm:$0xff]  }
 0x9ee   : > { %1428 = vxpose.xlu1.b32.end [2/2] (short) (narrow) %v2420_v62, 16 }
 0x9ef   : > { %1420 = vadd.xlane.f32.xlu0 %v1419_v63 }
 0xa05   : > { %1299 = vrot.lane.b32.xlu0 %v2973_v22, %s2663_s4 }
 0xa15   : > { %1245 = vadd.xlane.f32.xlu1 %v1244_v1 }
 0xa26   : > { %1517 = vrot.lane.b32.xlu1 %v2973_v22, %s2664_s10 }
 0xa66   : > { %v1443_v2 = vpop.trf.xlu1 }
 0xa67   : > { %v1459_v3 = vsel %vm744_vm2, %v1443_v2, 0.0 }
 0xa68   : > { %1460 = vadd.xlane.f32.xlu0 %v1459_v3 }
 0xa6a   : > { %v1444_v4 = vpop.trf.xlu1 }
 0xa6b   : > { %v1462_v5 = vsel %vm744_vm2, %v1444_v4, 0.0 }
 0xa6c   : > { %1463 = vadd.xlane.f32.xlu0 %v1462_v5 }
 0xa70   : > { %v1243_v49 = vpop.xlane.xlu0 %1242 }
 0xa74   : > { %v1418_v6 = vpop.xlane.xlu0 %1417 }
 0xa75   : > { %2421 = vrcp.f32 %v1418_v6 }
 0xa78   : > { %v1421_v7 = vpop.xlane.xlu0 %1420 }
 0xa79   : > { %2423 = vrcp.f32 %v1421_v7 }
 0xa7a   : > { %2425 = vrcp.f32 %v1243_v49 }
 0xa7c   : > { %v1300_v8 = vpop.permute.xlu0 %1299 }
 0xa7d   : > { %2174 = vmatpush3.bf16.msra.mxu0 %v1300_v8 }
 0xa7e   : > { %2185 = vmatprep.subr.bf16.mxu0 %v2660_v39 }
 0xa82   : > { %1470 = vrot.lane.b32.xlu0 %v2955_v50, %s2664_s10  ;;  %v2422_v22 = vpop.eup %2421 }
 0xa83   : > { %v1424_v10 = vmul.f32 %v2422_v22, %v2418_v57  ;;  %v2383_v57 = vld [vmem:[#allocation10 + $0x40] sm:$0xff]  }
 0xa86   : > { %v2424_v9 = vpop.eup %2423  ;;  %2292 = vrot.lane.b32.xlu0 %v2291_v19, %s2664_s10 }
 0xa87   : > { %v1425_v11 = vmul.f32 %v2424_v9, %v2420_v62  ;;  %v2426_v14 = vpop.eup %2425 }
 0xa88   : > { %v1249_v16 = vmul.f32 %v2426_v14, %v1225_v60 }
 0xa89   : > { %v1426_v12 = vpack.c.bf16 %v1425_v11, %v1424_v10 }
 0xa8a   : > { %2297 = vrot.lane.b32.xlu0 %v2296_v21, %s2664_s10 }
 0xa8e   : > { %2307 = vrot.lane.b32.xlu0 %v2306_v27, %s2663_s4 }
 0xa9e   : > { %v1246_v50 = vpop.xlane.xlu1 %1245 }
 0xa9f   : > { %2427 = vrcp.f32 %v1246_v50 }
 0xaa2   : > { %v1518_v13 = vpop.permute.xlu1 %1517 }
 0xaa3   : > { %2192 = vmatpush3.bf16.msra.mxu1 %v1518_v13 }
 0xaac   : > { %v2428_v15 = vpop.eup %2427 }
 0xaad   : > { %v1250_v17 = vmul.f32 %v2428_v15, %v1226_v0 }
 0xaaf   : > { %v1251_v19 = vpack.c.bf16 %v1250_v17, %v1249_v16 }
 0xab1   : > { %2176 = vmatmul.mubr.msk.bf16.vlgmr.msra.gmra.mxu0 %vm744_vm2, %v1251_v19 }
 0xab2   : > { %2187 = vmatprep.mubr.msk.bf16.mxu0 %vm2661_vm0, %v2660_v39  ;;  %v2372_v39 = vld [vmem:[#allocation10 + $0x30] sm:$0xff]  }
 0xaf1   : > { %v1461_v18 = vpop.xlane.xlu0 %1460 }
 0xaf2   : > { %2429 = vrcp.f32 %v1461_v18 }
 0xaf5   : > { %v1464_v20 = vpop.xlane.xlu0 %1463 }
 0xaf6   : > { %2431 = vrcp.f32 %v1464_v20 }
 0xaf9   : > { %v1471_v21 = vpop.permute.xlu0 %1470 }
 0xafa   : > { %2186 = vmatpush3.bf16.msra.mxu0 %v1471_v21 }
 0xafb   : > { %2103 = vmatprep.subr.bf16.mxu0 %v2369_v28 }
 0xafd   : > { %2188 = vmatmul.mubr.msk.bf16.vlgmr.msra.gmra.mxu0 %vm744_vm2, %v1426_v12 }
 0xafe   : > { %2104 = vmatpush3.bf16.msra.mxu0 %v2370_v29 }
 0xaff   : > { %v2430_v23 = vpop.eup %2429  ;;  %2105 = vmatprep.subr.bf16.mxu0 %v2371_v30 }
 0xb00   : > { %v1467_v25 = vmul.f32 %v2430_v23, %v1443_v2 }
 0xb02   : > { %2106 = vmatpush3.bf16.msra.mxu0 %v2372_v39 }
 0xb03   : > { %v2432_v24 = vpop.eup %2431  ;;  %2107 = vmatprep.subr.bf16.mxu0 %v2373_v33 }
 0xb04   : > { %v1468_v26 = vmul.f32 %v2432_v24, %v1444_v4  ;;  %v2293_v4 = vpop.permute.xlu0 %2292 }
 0xb05   : > { %v2295_v8 = vunpack.i.h.bf16 %v2293_v4  ;;  %v2294_v22 = vunpack.i.l.bf16 %v2293_v4 }
 0xb06   : > { %v1469_v27 = vpack.c.bf16 %v1468_v26, %v1467_v25  ;;  %2108 = vmatpush3.bf16.msra.mxu0 %v2374_v40 }
 0xb07   : > { %2109 = vmatprep.subr.bf16.mxu0 %v2375_v45  ;;  %v1621_v16 = vsel %vm696_vm1, %v2994_v43, %v2295_v8  ;;  %v1620_v17 = vsel %vm696_vm1, %v2992_v41, %v2294_v22 }
 0xb08   : > { %2194 = vmatmul.mubr.msk.bf16.vlgmr.msra.gmra.mxu1 %vm744_vm2, %v1469_v27  ;;  %v2298_v5 = vpop.permute.xlu0 %2297 }
 0xb09   : > { %v2300_v9 = vunpack.i.h.bf16 %v2298_v5  ;;  %v2299_v10 = vunpack.i.l.bf16 %v2298_v5 }
 0xb0a   : > { %2110 = vmatpush3.bf16.msra.mxu0 %v2376_v48 }
 0xb0b   : > { %2111 = vmatprep.subr.bf16.mxu0 %v2377_v51  ;;  %v1613_v19 = vsel %vm696_vm1, %v2990_v38, %v2300_v9  ;;  %v1612_v18 = vsel %vm696_vm1, %v2988_v34, %v2299_v10 }
 0xb0c   : > { %v2308_v49 = vpop.permute.xlu0 %2307 }
 0xb0d   : > { %v2310_v11 = vunpack.i.h.bf16 %v2308_v49  ;;  %v2309_v12 = vunpack.i.l.bf16 %v2308_v49 }
 0xb0e   : > { %2112 = vmatpush3.bf16.msra.mxu0 %v2378_v52 }
 0xb0f   : > { %2113 = vmatprep.subr.bf16.mxu0 %v2379_v44  ;;  %v1615_v21 = vsel %vm1614_vm3, %v1612_v18, %v2309_v12  ;;  %v1616_v23 = vsel %vm1614_vm3, %v1613_v19, %v2310_v11 }
 0xb12   : > { %2114 = vmatpush3.bf16.msra.mxu0 %v2380_v53 }
 0xb13   : > { %2115 = vmatprep.subr.bf16.mxu0 %v2381_v54 }
 0xb16   : > { %2116 = vmatpush3.bf16.msra.mxu0 %v2382_v56 }
 0xb17   : > { %2117 = vmatprep.subr.bf16.mxu0 %v2383_v57 }
 0xb1a   : > { %2118 = vmatpush3.bf16.msra.mxu0 %v2384_v59 }
 0xb71   : > { %v1339_v31 = vpop.f32.mrf.mxu0 }
 0xb73   : > { %v2177_v37 = vpop.f32.mrf.mxu0 }
 0xb75   : > { %v1342_v42 = vpop.f32.mrf.mxu0 }
 0xb76   : > { %v2301_v46 = vpack.i.bf16 %v1342_v42, %v1339_v31  ;;  %v2052_v31 = vld [vmem:[%s3175_s5] ss:$0 sm:$0xff] }
 0xb77   : > { %v2178_v47 = vpop.f32.mrf.mxu0 }
 0xb78   : > { %2302 = vrot.lane.b32.xlu1 %v2301_v46, %s2663_s4 }
 0xbbd   : > { %v1510_v55 = vpop.f32.mrf.mxu0 }
 0xbbf   : > { %v2189_v58 = vpop.f32.mrf.mxu0 }
 0xbc1   : > { %v1513_v60 = vpop.f32.mrf.mxu0 }
 0xbc2   : > { %v2316_v61 = vpack.i.bf16 %v1513_v60, %v1510_v55 }
 0xbc3   : > { %v2190_v62 = vpop.f32.mrf.mxu0 }
 0xbc4   : > { %2317 = vrot.lane.b32.xlu0 %v2316_v61, %s2662_s11 }
 0xbc8   : > { %v1557_v63 = vpop.f32.mrf.mxu1 }
 0xbca   : > { %v2195_v0 = vpop.f32.mrf.mxu1 }
 0xbcc   : > { %v1560_v1 = vpop.f32.mrf.mxu1 }
 0xbcd   : > { %v2311_v2 = vpack.i.bf16 %v1560_v1, %v1557_v63  ;;  %v2069_v63 = vld [vmem:[%s3176_s6] ss:$0 sm:$0xff] }
 0xbce   : > { %v2196_v3 = vpop.f32.mrf.mxu1  ;;  %v2070_v1 = vld [vmem:[%s3177_s7] ss:$0 sm:$0xff] }
 0xbcf   : > { %2312 = vrot.lane.b32.xlu1 %v2311_v2, %s2662_s11  ;;  %s2578_s11 = scalar_lea.vmem %s2577_s17, 512 }
 0xbd0   : > { %p2580_p1 = scmp.lt.s32.totalorder %s2578_s11, %s2572_s9 }
 0xbd2   : > { %p2581_p4 = por %p2580_p1, %p2579_p10 }
 0xbd4   : > { %p2582_p6 = pnand %p2581_p4, %p2575_p2 }
 0xbea   : > { %v2303_v6 = vpop.permute.xlu1 %2302 }
 0xbeb   : > { %v2305_v50 = vunpack.i.h.bf16 %v2303_v6  ;;  %v2304_v13 = vunpack.i.l.bf16 %v2303_v6 }
 0xbed   : > { %v1622_v26 = vsel %vm1614_vm3, %v1620_v17, %v2304_v13  ;;  %v1623_v43 = vsel %vm1614_vm3, %v1621_v16, %v2305_v50 }
 0xc36   : > { %v2318_v7 = vpop.permute.xlu0 %2317 }
 0xc37   : > { %v2320_v14 = vunpack.i.h.bf16 %v2318_v7  ;;  %v2319_v15 = vunpack.i.l.bf16 %v2318_v7 }
 0xc39   : > { %v1618_v27 = vsel %vm1617_vm4, %v1615_v21, %v2319_v15  ;;  %v1619_v28 = vsel %vm1617_vm4, %v1616_v23, %v2320_v14 }
 0xc3a   : > { %v1626_v38 = vpack.c.bf16 %v1619_v28, %v1618_v27 }
 0xc41   : > { %v2313_v20 = vpop.permute.xlu1 %2312 }
 0xc42   : > { %v2315_v24 = vunpack.i.h.bf16 %v2313_v20  ;;  %v2314_v25 = vunpack.i.l.bf16 %v2313_v20 }
 0xc44   : > { %v1624_v41 = vsel %vm1617_vm4, %v1622_v26, %v2314_v25  ;;  %v1625_v29 = vsel %vm1617_vm4, %v1623_v43, %v2315_v24 }
 0xc45   : > { %v1627_v30 = vpack.c.bf16 %v1625_v29, %v1624_v41 }
 0xc47   : > { %1795 = vmatprep.mubr.bf16.mxu0 %v1627_v30 }
 0xc48   : > { %1796 = vmatmul.mubr.bf16.vlgmr.msra.gmra.mxu0 %v1626_v38 }
 0xd08   : > { %v2119_v34 = vpop.f32.mrf.mxu0 }
 0xd0a   : > { %v2120_v39 = vpop.f32.mrf.mxu0 }
 0xd0b   : > { %v2121_v33 = vadd.f32 %v2120_v39, %v2119_v34 }
 0xd0c   : > { %v2122_v37 = vpop.f32.mrf.mxu0 }
 0xd0d   : > { %v1798_v40 = vadd.f32 %v2121_v33, %v2052_v31 }
 0xd0e   : > { %v2123_v42 = vpop.f32.mrf.mxu0 }
 0xd0f   : > { %v2124_v45 = vadd.f32 %v2123_v42, %v2122_v37  ;;  %1804 = vadd.xlane.f32.xlu1 %v1798_v40 }
 0xd11   : > { %v1801_v46 = vadd.f32 %v2124_v45, %v2052_v31 }
 0xd13   : > { %1806 = vadd.xlane.f32.xlu0 %v1801_v46 }
 0xd98   : > { %v1805_v47 = vpop.xlane.xlu1 %1804 }
 0xd99   : > { %v1809_v48 = vmul.f32 0.0078125, %v1805_v47 }
 0xd9b   : > { %v1811_v51 = vsub.f32 %v1798_v40, %v1809_v48 }
 0xd9c   : > { %v1807_v52 = vpop.xlane.xlu0 %1806 }
 0xd9d   : > { %v1810_v44 = vmul.f32 0.0078125, %v1807_v52  ;;  %v1813_v53 = vmul.f32 %v1811_v51, %v1811_v51 }
 0xd9f   : > { %v1812_v54 = vsub.f32 %v1801_v46, %v1810_v44  ;;  %1815 = vadd.xlane.f32.xlu0 %v1813_v53 }
 0xda1   : > { %v1814_v55 = vmul.f32 %v1812_v54, %v1812_v54 }
 0xda3   : > { %1817 = vadd.xlane.f32.xlu1 %v1814_v55 }
 0xe28   : > { %v1816_v56 = vpop.xlane.xlu0 %1815 }
 0xe29   : > { %v1819_v58 = vmul.f32 0.0078125, %v1816_v56 }
 0xe2b   : > { %v1821_v60 = vadd.f32 1e-05, %v1819_v58 }
 0xe2c   : > { %v1818_v61 = vpop.xlane.xlu1 %1817 }
 0xe2d   : > { %2433 = vrsqrt.f32 %v1821_v60  ;;  %v1820_v57 = vmul.f32 0.0078125, %v1818_v61 }
 0xe2f   : > { %v1822_v59 = vadd.f32 1e-05, %v1820_v57 }
 0xe31   : > { %2435 = vrsqrt.f32 %v1822_v59 }
 0xe3a   : > { %v2434_v62 = vpop.eup %2433 }
 0xe3b   : > { %v1825_v0 = vmul.f32 %v2434_v62, %v1811_v51 }
 0xe3d   : > { %v1834_v2 = vmul.f32 %v2069_v63, %v1825_v0 }
 0xe3e   : > { %v2436_v3 = vpop.eup %2435 }
 0xe3f   : > { %v1843_v4 = vadd.f32 %v2070_v1, %v1834_v2  ;;  %v1826_v5 = vmul.f32 %v2436_v3, %v1812_v54 }
 0xe41   : > { %v1845_v49 = vadd.f32 %v1843_v4, %v2933_v35  ;;  %v1835_v6 = vmul.f32 %v2069_v63, %v1826_v5  ;;  %v2437_v35 = vld [vmem:[%s2913_s2 + $0x8] sm:$0xff] }
 0xe43   : > { %v1844_v7 = vadd.f32 %v2070_v1, %v1835_v6  ;;  %v1847_v8 = vadd.f32 %v1845_v49, %v2928_v32 }
 0xe45   : > { %v1846_v22 = vadd.f32 %v1844_v7, %v2937_v36  ;;  %1849 = vst [vmem:[%s406_s19] sm:$0xff] %v1847_v8 }
 0xe47   : > { %v1848_v9 = vadd.f32 %v2437_v35, %v1846_v22 }
 0xe49   : > { %1850 = vst [vmem:[%s406_s19 + $0x8] sm:$0xff] %v1848_v9 }
 0xe4a   : > { %2585 = shalt.err (!%p2582_p6)
}
 0xe4b   : > { %s2586_s2 = scalar_lea.hbm %s3124_s26, 256  ;;  %s2590_s15 = scalar_lea.hbm %s3178_s8, 512 }
 0xe4c   : > { %p2587_p7 = scmp.ne.s32.totalorder %s3124_s26, %s2586_s2  ;;  %p2591_p11 = scmp.lt.s32.totalorder %s3124_s26, %s3178_s8 }
 0xe4d   : > { %p2592_p3 = scmp.lt.s32.totalorder %s2590_s15, %s2586_s2 }
 0xe4e   : > { %p2588_p5 = pnand %p2587_p7, %p3213_p13 }
 0xe4f   : > { %p2593_p12 = por %p2592_p3, %p2591_p11 }
 0xe50   : > { %p2589_p8 = pneg %p2588_p5 }
 0xe52   : > { %p2594_p9 = pnand %p2593_p12, %p2589_p8 }
 0xe54   : > { %2597 = shalt.err (!%p2594_p9)
}
 0xe55   : > { %s2666_s3 = smov 128   ;;  %s2667_s23 = smov 8  }
 0xe56   : > { %2213 = dma.vmem_to_hbm [thread:$0]  (%p3213_p13), %s3126_s25, 256, %s3124_s26, %s1852_s13, %s2666_s3, %s2666_s3, %s2667_s23  }
 0xe57 PF: > { %s1880_s16 = sand.u32 1, %s2636_s27   ;;  %p3214_p0 = scmp.ne.s32.totalorder %s3195_s12, 0 }
 0xe58   : > { %p3215_p2 = scmp.ge.s32.totalorder %s2648_s30, 2  ;;  %s1881_s20 = scalar_lea.sflag [#allocation4], %s1880_s16 }
 0xe5a   : > { %p2233_p10 = pnand %p3215_p2, %p3214_p0 }
 0xe5c   : > { %p2234_p1 = pneg %p2233_p10 }
 0xe5e   : > { %2631 = dma.done.wait (%p2234_p1), %s1881_s20, 256  }
 0xe5f   : > { %2633 = vsyncadd (%p2234_p1), %s1881_s20, 4294967040  ;;  %s3216_s30 = sld [smem:[#allocation18_spill]]  ;;  %s3219_s27 = smov %s2640_s28 }
 0xe60   : > { %s3217_s19 = sld [smem:[#allocation17_spill]] }
 0xe61   : > { %s3218_s29 = sld [smem:[#allocation19_spill]] }
 0xe65   : > { %p25_p4 = scmp.ge.s32.totalorder %s3216_s30, 4  }
 0xe66   : > { %s3220_s28 = smov %s3217_s19 }
 0xe67   :  { %27 = sbr.rel (!%p25_p4) target bundleno = 13 (0xd), region = 122 }
 0xe6c   :  { %1886 = vsyncpa [#allocation3], 1 }
 0xe6d   :  { %1888 = vsyncpa [#allocation3 + $0x1], 1 }
 0xe6e   :  { %1889 = vsyncpa [#allocation6], 1 }
 0xe6f   :  { %1891 = vsyncpa [#allocation6 + $0x1], 1 }
 0xe70   :  { %1892 = vsyncpa [#allocation9], 1 }
 0xe71   :  { %1893 = vsyncpa [#allocation4], 1 }
 0xe72   :  { %1895 = vsyncpa [#allocation4 + $0x1], 1 }

</bundles_post_ra>
